<compile_context>
chip_gen: v5e
topology: v5e:2x2
jax: 0.10.0
libtpu: 0.0.40
codegen_flags: <defaults>
</compile_context>

<pallas_src>
import math

import numpy as np
import jax
import jax.numpy as jnp
from jax.experimental import pallas as pl
from jax.experimental.pallas import tpu as pltpu


# --------------------------- Pallas kernel ------------------------------------
def _make_kernel(ends, approx, dt, H, W):
    """Kernel body: grid step k computes every order's chain block for case k."""
    ncases = len(ends)

    def kernel(tab_ref, out_ref):
        # hoisted once for the whole kernel: bond-index grids + zero canvas
        rows = jax.lax.broadcasted_iota(jnp.int32, (H, W), 0)
        cols = jax.lax.broadcasted_iota(jnp.int32, (H, W), 1)
        zero = jnp.zeros((H, W), jnp.float32)

        for kcase in range(ncases):
            end = ends[kcase]
            r = 1 if end == 0 else 2      # left bond dim of the elementary core
            s = 1 if end == -1 else 2     # right bond dim
            # coefficients f_L = (-i*dt)^L / L!  (only for end == 0, else 1)
            fs = []
            for i in range(approx):
                L = i + 1
                f = ((-1j * dt) ** L / math.factorial(L)) if end == 0 else (1.0 + 0.0j)
                fs.append((float(f.real), float(f.imag)))

            @pl.when(pl.program_id(0) == kcase)
            def _case(kcase=kcase, r=r, s=s, fs=fs):
                # hoist every SMEM scalar read (elementary-core entries) once
                Mv = {(a, p, q, b): tab_ref[kcase, ((a * 2 + p) * 2 + q) * 2 + b]
                      for a in range(r) for p in range(2)
                      for q in range(2) for b in range(s)}

                def bond_masks(shift):
                    # bond bit selecting the core's (a, b) index at this level
                    mr = ((rows & (1 << shift)) != 0) if r == 2 else None
                    mc = ((cols & (1 << shift)) != 0) if s == 2 else None
                    return mr, mc

                def mup(m, q, mr, mc):
                    # canvas[i, j] = core[(i >> shift) % r, m, q, (j >> shift) % s]
                    def pick(a):
                        if s == 2:
                            return jnp.where(mc, Mv[(a, m, q, 1)], Mv[(a, m, q, 0)])
                        return zero + Mv[(a, m, q, 0)]
                    if r == 2:
                        return jnp.where(mr, pick(1), pick(0))
                    return pick(0)

                # L = 1: the chain is the elementary core, periodically tiled
                mr, mc = bond_masks(0)
                C = {(p, q): mup(p, q, mr, mc) for p in range(2) for q in range(2)}

                for L in range(1, approx + 1):
                    if L > 1:
                        # kron-expand by one more core: a single broadcasted
                        # multiply-add per (p, q) channel, fully in registers.
                        mr, mc = bond_masks(L - 1)
                        Mu = {(m, q): mup(m, q, mr, mc)
                              for m in range(2) for q in range(2)}
                        C = {(p, q): C[(p, 0)] * Mu[(0, q)] + C[(p, 1)] * Mu[(1, q)]
                             for p in range(2) for q in range(2)}
                    # scale by f_L (chain is real) and emit the order-L block
                    fr, fi = fs[L - 1]
                    for p in range(2):
                        for q in range(2):
                            base = (L - 1) * 8 + (p * 2 + q) * 2
                            if fr == 1.0:
                                re = C[(p, q)]
                            elif fr == 0.0:
                                re = zero
                            else:
                                re = fr * C[(p, q)]
                            im = zero if fi == 0.0 else fi * C[(p, q)]
                            out_ref[0, base + 0, :, :] = re
                            out_ref[0, base + 1, :, :] = im

    return kernel


# --------------------------- JAX glue ------------------------------------------
def _build_core(J, end):
    """The elementary (r, 2, 2, s) real core, exactly as built in the module."""
    J = jnp.asarray(J, jnp.float32)
    Z = jnp.array([[1.0, 0.0], [0.0, -1.0]], jnp.float32)
    X = jnp.array([[0.0, 1.0], [1.0, 0.0]], jnp.float32)
    I2 = jnp.eye(2, dtype=jnp.float32)
    if end == 0:
        core = jnp.zeros((1, 2, 2, 2), jnp.float32)
        core = core.at[0, :, :, 0].set(I2)
        core = core.at[0, :, :, 1].set(J[0] * Z)
    elif end == -1:
        core = jnp.zeros((2, 2, 2, 1), jnp.float32)
        core = core.at[1, :, :, 0].set(Z)
        core = core.at[0, :, :, 0].set(J[1] * Z + J[0] * X)
    else:
        core = jnp.zeros((2, 2, 2, 2), jnp.float32)
        core = core.at[0, :, :, 0].set(I2)
        core = core.at[1, :, :, 1].set(I2)
        core = core.at[0, :, :, 1].set(J[0] * Z)
    return core


def _core_addition(c1, c2, end):
    if end == 0:
        return jnp.concatenate((c1, c2), axis=3)
    elif end == -1:
        return jnp.concatenate((c1, c2), axis=0)
    pc1 = jnp.concatenate(
        (c1, jnp.zeros((c2.shape[0], 2, 2, c1.shape[3]), c1.dtype)), axis=0)
    pc2 = jnp.concatenate(
        (jnp.zeros((c1.shape[0], 2, 2, c2.shape[3]), c2.dtype), c2), axis=0)
    return jnp.concatenate((pc1, pc2), axis=3)


def perceptron_forward_cases(cases, approx=1, dt=0.01):
    """Fused Pallas forward for a list of (J, end) perceptron sites.

    One pallas_call computes the chain contractions (core_multiplication) for
    every case and approximation order; identity core, core_addition and
    complex packing remain plain-JAX bookkeeping.  Returns a list of complex64
    (D_left, 2, 2, D_right) MPO cores, one per case.
    """
    ends = tuple(int(end) for _, end in cases)
    ncases = len(ends)

    # pack each (<=2, 2, 2, <=2) elementary core into one 16-scalar SMEM row,
    # indexed ((a*2+p)*2+q)*2+b.
    tab_rows = []
    for J, end in cases:
        cr = _build_core(J, end)
        r, _, _, s = cr.shape
        row = jnp.zeros((2, 2, 2, 2), jnp.float32).at[:r, :, :, :s].set(cr)
        tab_rows.append(row.reshape(16))
    table = jnp.stack(tab_rows)                        # (ncases, 16) -> SMEM

    # lane-dense (8,128)-aligned canvases: the order-L block (r^L, s^L) lives
    # at the canvas origin; glue slices the valid region back out.
    max_rL = max((1 if e == 0 else 2) ** approx for e in ends)
    max_sL = max((1 if e == -1 else 2) ** approx for e in ends)
    H = max(8, ((max_rL + 7) // 8) * 8)
    W = max(128, ((max_sL + 127) // 128) * 128)

    kernel = _make_kernel(ends, approx, dt, H, W)
    out = pl.pallas_call(
        kernel,
        out_shape=jax.ShapeDtypeStruct((ncases, 8 * approx, H, W), jnp.float32),
        grid=(ncases,),
        in_specs=[pl.BlockSpec(memory_space=pltpu.MemorySpace.SMEM)],
        out_specs=pl.BlockSpec((1, 8 * approx, H, W), lambda c: (c, 0, 0, 0)),
        compiler_params=pltpu.CompilerParams(
            dimension_semantics=("parallel",)),   # v7x: the 2 TCs split the cases
    )(table)

    # glue: identity start core + core_addition of the f-scaled chain blocks
    results = []
    for k, (J, end) in enumerate(cases):
        r = 1 if end == 0 else 2
        s = 1 if end == -1 else 2
        blocks = out[k].reshape(approx, 2, 2, 2, H, W)   # (order, p, q, re/im, A, B)
        core = jnp.eye(2, dtype=jnp.complex64).reshape(1, 2, 2, 1)
        for i in range(approx):
            L = i + 1
            RL, RS = r ** L, s ** L
            o = blocks[i, :, :, :, :RL, :RS]              # (p, q, x, RL, RS)
            blk = jnp.transpose(jax.lax.complex(o[:, :, 0], o[:, :, 1]),
                                (2, 0, 1, 3))             # (RL, 2, 2, RS)
            core = _core_addition(core, blk, end)
        results.append(core)
    return results


def perceptron_forward(J, approx=1, dt=0.01, end=0):
    """Single-site API parity with perceptron.forward()."""
    return perceptron_forward_cases([(J, end)], approx=approx, dt=dt)[0]


# ---------------- numpy reference (same math / same bond convention) -----------
def _ref_core_addition(c1, c2, end):
    if end == 0:
        return np.concatenate((c1, c2), axis=3)
    elif end == -1:
        return np.concatenate((c1, c2), axis=0)
    pc1 = np.concatenate(
        (c1, np.zeros((c2.shape[0], 2, 2, c1.shape[3]), c1.dtype)), axis=0)
    pc2 = np.concatenate(
        (np.zeros((c1.shape[0], 2, 2, c2.shape[3]), c2.dtype), c2), axis=0)
    return np.concatenate((pc1, pc2), axis=3)


def _ref_forward(core_np, approx, end, dt):
    r, _, _, s = core_np.shape
    out = np.zeros((1, 2, 2, 1), np.complex128)
    out[0, :, :, 0] = np.eye(2)
    for i in range(approx):
        L = i + 1
        f = ((-1j * dt) ** L / math.factorial(L)) if end == 0 else 1.0
        T = np.transpose(core_np, (0, 3, 1, 2))          # (r, s, 2, 2)
        for _l in range(1, L):
            RL, RS = T.shape[0], T.shape[1]
            newT = np.zeros((RL * r, RS * s, 2, 2), np.complex128)
            for a in range(r):
                for b in range(s):
                    # new[a*RL+A, b*RS+B] = T[A,B] @ M[a,:,:,b]
                    newT[a * RL:(a + 1) * RL, b * RS:(b + 1) * RS] = (
                        T @ core_np[a, :, :, b])
            T = newT
        block = f * np.transpose(T, (0, 2, 3, 1))        # (RL, 2, 2, RS)
        out = _ref_core_addition(out, block, end)
    return out


def _core_np(J, end):
    return np.asarray(_build_core(jnp.asarray(J, jnp.float32), end), np.float64) + 0j


if __name__ == "__main__":
    key = jax.random.PRNGKey(0)
    k1, k2 = jax.random.split(key)
    approx, dt = 3, 0.01

    # end=0 (input site):   J = pi * (2*rand(1) - 1)
    J0 = jnp.pi * (2.0 * jax.random.uniform(k1, (1,), jnp.float32) - 1.0)
    # end=-1 (output qubit): h = 2*pi*rand(2)
    h = 2.0 * jnp.pi * jax.random.uniform(k2, (2,), jnp.float32)

    # all three perceptron sites in ONE fused pallas_call
    core_in, core_out, core_mid = perceptron_forward_cases(
        [(J0, 0), (h, -1), (J0, 1)], approx=approx, dt=dt)
    jax.block_until_ready((core_in, core_out, core_mid))

    ref_in = _ref_forward(_core_np(J0, 0), approx, 0, dt)     # (1, 2, 2, 15)
    ref_out = _ref_forward(_core_np(h, -1), approx, -1, dt)   # (15, 2, 2, 1)
    ref_mid = _ref_forward(_core_np(J0, 1), approx, 1, dt)    # (15, 2, 2, 15)

    np.testing.assert_allclose(np.asarray(core_in), ref_in, rtol=1e-3, atol=1e-3)
    np.testing.assert_allclose(np.asarray(core_out), ref_out, rtol=1e-3, atol=1e-3)
    np.testing.assert_allclose(np.asarray(core_mid), ref_mid, rtol=1e-3, atol=1e-3)

    print("KERNEL_OK")
</pallas_src>

<mosaic_0001>
module attributes {stable_mosaic.version = 11 : i64} {
  func.func @kernel(%arg0: i32, %arg1: memref<3x16xf32, #tpu.memory_space<smem>>, %arg2: memref<1x24x8x128xf32, #tpu.memory_space<vmem>>) attributes {dimension_semantics = [#tpu.dimension_semantics<parallel>], iteration_bounds = array<i64: 3>, scalar_prefetch = 0 : i64, scratch_operands = 0 : i64, tpu.core_type = #tpu.core_type<tc>, window_params = [{transform_indices = @transform_0, window_bounds = array<i64: 3, 16>}, {transform_indices = @transform_1, window_bounds = array<i64: 1, 24, 8, 128>}]} {
    %0 = tpu.iota {dimensions = array<i32: 0>} : vector<8x128xi32>
    %1 = tpu.iota {dimensions = array<i32: 1>} : vector<8x128xi32>
    %cst = arith.constant 0.000000e+00 : f32
    %2 = vector.broadcast %cst : f32 to vector<8x128xf32>
    %c0_i32 = arith.constant 0 : i32
    %3 = arith.cmpi eq, %arg0, %c0_i32 : i32
    %4 = arith.extui %3 : i1 to i32
    %c0_i32_0 = arith.constant 0 : i32
    %5 = arith.cmpi ne, %4, %c0_i32_0 : i32
    scf.if %5 {
      %c0 = arith.constant 0 : index
      %c0_3 = arith.constant 0 : index
      %12 = memref.load %arg1[%c0, %c0_3] : memref<3x16xf32, #tpu.memory_space<smem>>
      %c0_4 = arith.constant 0 : index
      %c1 = arith.constant 1 : index
      %13 = memref.load %arg1[%c0_4, %c1] : memref<3x16xf32, #tpu.memory_space<smem>>
      %c0_5 = arith.constant 0 : index
      %c2 = arith.constant 2 : index
      %14 = memref.load %arg1[%c0_5, %c2] : memref<3x16xf32, #tpu.memory_space<smem>>
      %c0_6 = arith.constant 0 : index
      %c3 = arith.constant 3 : index
      %15 = memref.load %arg1[%c0_6, %c3] : memref<3x16xf32, #tpu.memory_space<smem>>
      %c0_7 = arith.constant 0 : index
      %c4 = arith.constant 4 : index
      %16 = memref.load %arg1[%c0_7, %c4] : memref<3x16xf32, #tpu.memory_space<smem>>
      %c0_8 = arith.constant 0 : index
      %c5 = arith.constant 5 : index
      %17 = memref.load %arg1[%c0_8, %c5] : memref<3x16xf32, #tpu.memory_space<smem>>
      %c0_9 = arith.constant 0 : index
      %c6 = arith.constant 6 : index
      %18 = memref.load %arg1[%c0_9, %c6] : memref<3x16xf32, #tpu.memory_space<smem>>
      %c0_10 = arith.constant 0 : index
      %c7 = arith.constant 7 : index
      %19 = memref.load %arg1[%c0_10, %c7] : memref<3x16xf32, #tpu.memory_space<smem>>
      %c1_i32_11 = arith.constant 1 : i32
      %20 = vector.broadcast %c1_i32_11 : i32 to vector<8x128xi32>
      %21 = arith.andi %1, %20 : vector<8x128xi32>
      %c0_i32_12 = arith.constant 0 : i32
      %22 = vector.broadcast %c0_i32_12 : i32 to vector<8x128xi32>
      %23 = arith.cmpi ne, %21, %22 : vector<8x128xi32>
      %24 = vector.broadcast %13 : f32 to vector<8x128xf32>
      %25 = vector.broadcast %12 : f32 to vector<8x128xf32>
      %26 = arith.select %23, %24, %25 : vector<8x128xi1>, vector<8x128xf32>
      %27 = vector.broadcast %15 : f32 to vector<8x128xf32>
      %28 = vector.broadcast %14 : f32 to vector<8x128xf32>
      %29 = arith.select %23, %27, %28 : vector<8x128xi1>, vector<8x128xf32>
      %30 = vector.broadcast %17 : f32 to vector<8x128xf32>
      %31 = vector.broadcast %16 : f32 to vector<8x128xf32>
      %32 = arith.select %23, %30, %31 : vector<8x128xi1>, vector<8x128xf32>
      %33 = vector.broadcast %19 : f32 to vector<8x128xf32>
      %34 = vector.broadcast %18 : f32 to vector<8x128xf32>
      %35 = arith.select %23, %33, %34 : vector<8x128xi1>, vector<8x128xf32>
      %cst_13 = arith.constant -0.00999999977 : f32
      %36 = vector.broadcast %cst_13 : f32 to vector<8x128xf32>
      %37 = arith.mulf %36, %26 : vector<8x128xf32>
      %c0_14 = arith.constant 0 : index
      %c0_15 = arith.constant 0 : index
      %c0_16 = arith.constant 0 : index
      %c0_17 = arith.constant 0 : index
      %38 = vector.load %arg2[%c0_14, %c0_15, %c0_16, %c0_17] : memref<1x24x8x128xf32, #tpu.memory_space<vmem>>, vector<1x1x8x128xf32>
      %39 = vector.shape_cast %38 : vector<1x1x8x128xf32> to vector<8x128xf32>
      %40 = vector.shape_cast %2 : vector<8x128xf32> to vector<1x1x8x128xf32>
      tpu.vector_store %arg2[%c0_14, %c0_15, %c0_16, %c0_17], %40 {strides = array<i32>} : memref<1x24x8x128xf32, #tpu.memory_space<vmem>>, vector<1x1x8x128xf32>,
      %c0_18 = arith.constant 0 : index
      %c1_19 = arith.constant 1 : index
      %c0_20 = arith.constant 0 : index
      %c0_21 = arith.constant 0 : index
      %41 = vector.load %arg2[%c0_18, %c1_19, %c0_20, %c0_21] : memref<1x24x8x128xf32, #tpu.memory_space<vmem>>, vector<1x1x8x128xf32>
      %42 = vector.shape_cast %41 : vector<1x1x8x128xf32> to vector<8x128xf32>
      %43 = vector.shape_cast %37 : vector<8x128xf32> to vector<1x1x8x128xf32>
      tpu.vector_store %arg2[%c0_18, %c1_19, %c0_20, %c0_21], %43 {strides = array<i32>} : memref<1x24x8x128xf32, #tpu.memory_space<vmem>>, vector<1x1x8x128xf32>,
      %cst_22 = arith.constant -0.00999999977 : f32
      %44 = vector.broadcast %cst_22 : f32 to vector<8x128xf32>
      %45 = arith.mulf %44, %29 : vector<8x128xf32>
      %c0_23 = arith.constant 0 : index
      %c2_24 = arith.constant 2 : index
      %c0_25 = arith.constant 0 : index
      %c0_26 = arith.constant 0 : index
      %46 = vector.load %arg2[%c0_23, %c2_24, %c0_25, %c0_26] : memref<1x24x8x128xf32, #tpu.memory_space<vmem>>, vector<1x1x8x128xf32>
      %47 = vector.shape_cast %46 : vector<1x1x8x128xf32> to vector<8x128xf32>
      %48 = vector.shape_cast %2 : vector<8x128xf32> to vector<1x1x8x128xf32>
      tpu.vector_store %arg2[%c0_23, %c2_24, %c0_25, %c0_26], %48 {strides = array<i32>} : memref<1x24x8x128xf32, #tpu.memory_space<vmem>>, vector<1x1x8x128xf32>,
      %c0_27 = arith.constant 0 : index
      %c3_28 = arith.constant 3 : index
      %c0_29 = arith.constant 0 : index
      %c0_30 = arith.constant 0 : index
      %49 = vector.load %arg2[%c0_27, %c3_28, %c0_29, %c0_30] : memref<1x24x8x128xf32, #tpu.memory_space<vmem>>, vector<1x1x8x128xf32>
      %50 = vector.shape_cast %49 : vector<1x1x8x128xf32> to vector<8x128xf32>
      %51 = vector.shape_cast %45 : vector<8x128xf32> to vector<1x1x8x128xf32>
      tpu.vector_store %arg2[%c0_27, %c3_28, %c0_29, %c0_30], %51 {strides = array<i32>} : memref<1x24x8x128xf32, #tpu.memory_space<vmem>>, vector<1x1x8x128xf32>,
      %cst_31 = arith.constant -0.00999999977 : f32
      %52 = vector.broadcast %cst_31 : f32 to vector<8x128xf32>
      %53 = arith.mulf %52, %32 : vector<8x128xf32>
      %c0_32 = arith.constant 0 : index
      %c4_33 = arith.constant 4 : index
      %c0_34 = arith.constant 0 : index
      %c0_35 = arith.constant 0 : index
      %54 = vector.load %arg2[%c0_32, %c4_33, %c0_34, %c0_35] : memref<1x24x8x128xf32, #tpu.memory_space<vmem>>, vector<1x1x8x128xf32>
      %55 = vector.shape_cast %54 : vector<1x1x8x128xf32> to vector<8x128xf32>
      %56 = vector.shape_cast %2 : vector<8x128xf32> to vector<1x1x8x128xf32>
      tpu.vector_store %arg2[%c0_32, %c4_33, %c0_34, %c0_35], %56 {strides = array<i32>} : memref<1x24x8x128xf32, #tpu.memory_space<vmem>>, vector<1x1x8x128xf32>,
      %c0_36 = arith.constant 0 : index
      %c5_37 = arith.constant 5 : index
      %c0_38 = arith.constant 0 : index
      %c0_39 = arith.constant 0 : index
      %57 = vector.load %arg2[%c0_36, %c5_37, %c0_38, %c0_39] : memref<1x24x8x128xf32, #tpu.memory_space<vmem>>, vector<1x1x8x128xf32>
      %58 = vector.shape_cast %57 : vector<1x1x8x128xf32> to vector<8x128xf32>
      %59 = vector.shape_cast %53 : vector<8x128xf32> to vector<1x1x8x128xf32>
      tpu.vector_store %arg2[%c0_36, %c5_37, %c0_38, %c0_39], %59 {strides = array<i32>} : memref<1x24x8x128xf32, #tpu.memory_space<vmem>>, vector<1x1x8x128xf32>,
      %cst_40 = arith.constant -0.00999999977 : f32
      %60 = vector.broadcast %cst_40 : f32 to vector<8x128xf32>
      %61 = arith.mulf %60, %35 : vector<8x128xf32>
      %c0_41 = arith.constant 0 : index
      %c6_42 = arith.constant 6 : index
      %c0_43 = arith.constant 0 : index
      %c0_44 = arith.constant 0 : index
      %62 = vector.load %arg2[%c0_41, %c6_42, %c0_43, %c0_44] : memref<1x24x8x128xf32, #tpu.memory_space<vmem>>, vector<1x1x8x128xf32>
      %63 = vector.shape_cast %62 : vector<1x1x8x128xf32> to vector<8x128xf32>
      %64 = vector.shape_cast %2 : vector<8x128xf32> to vector<1x1x8x128xf32>
      tpu.vector_store %arg2[%c0_41, %c6_42, %c0_43, %c0_44], %64 {strides = array<i32>} : memref<1x24x8x128xf32, #tpu.memory_space<vmem>>, vector<1x1x8x128xf32>,
      %c0_45 = arith.constant 0 : index
      %c7_46 = arith.constant 7 : index
      %c0_47 = arith.constant 0 : index
      %c0_48 = arith.constant 0 : index
      %65 = vector.load %arg2[%c0_45, %c7_46, %c0_47, %c0_48] : memref<1x24x8x128xf32, #tpu.memory_space<vmem>>, vector<1x1x8x128xf32>
      %66 = vector.shape_cast %65 : vector<1x1x8x128xf32> to vector<8x128xf32>
      %67 = vector.shape_cast %61 : vector<8x128xf32> to vector<1x1x8x128xf32>
      tpu.vector_store %arg2[%c0_45, %c7_46, %c0_47, %c0_48], %67 {strides = array<i32>} : memref<1x24x8x128xf32, #tpu.memory_space<vmem>>, vector<1x1x8x128xf32>,
      %c2_i32_49 = arith.constant 2 : i32
      %68 = vector.broadcast %c2_i32_49 : i32 to vector<8x128xi32>
      %69 = arith.andi %1, %68 : vector<8x128xi32>
      %c0_i32_50 = arith.constant 0 : i32
      %70 = vector.broadcast %c0_i32_50 : i32 to vector<8x128xi32>
      %71 = arith.cmpi ne, %69, %70 : vector<8x128xi32>
      %72 = vector.broadcast %13 : f32 to vector<8x128xf32>
      %73 = vector.broadcast %12 : f32 to vector<8x128xf32>
      %74 = arith.select %71, %72, %73 : vector<8x128xi1>, vector<8x128xf32>
      %75 = vector.broadcast %15 : f32 to vector<8x128xf32>
      %76 = vector.broadcast %14 : f32 to vector<8x128xf32>
      %77 = arith.select %71, %75, %76 : vector<8x128xi1>, vector<8x128xf32>
      %78 = vector.broadcast %17 : f32 to vector<8x128xf32>
      %79 = vector.broadcast %16 : f32 to vector<8x128xf32>
      %80 = arith.select %71, %78, %79 : vector<8x128xi1>, vector<8x128xf32>
      %81 = vector.broadcast %19 : f32 to vector<8x128xf32>
      %82 = vector.broadcast %18 : f32 to vector<8x128xf32>
      %83 = arith.select %71, %81, %82 : vector<8x128xi1>, vector<8x128xf32>
      %84 = arith.mulf %26, %74 : vector<8x128xf32>
      %85 = arith.mulf %29, %80 : vector<8x128xf32>
      %86 = arith.addf %84, %85 : vector<8x128xf32>
      %87 = arith.mulf %26, %77 : vector<8x128xf32>
      %88 = arith.mulf %29, %83 : vector<8x128xf32>
      %89 = arith.addf %87, %88 : vector<8x128xf32>
      %90 = arith.mulf %32, %74 : vector<8x128xf32>
      %91 = arith.mulf %35, %80 : vector<8x128xf32>
      %92 = arith.addf %90, %91 : vector<8x128xf32>
      %93 = arith.mulf %32, %77 : vector<8x128xf32>
      %94 = arith.mulf %35, %83 : vector<8x128xf32>
      %95 = arith.addf %93, %94 : vector<8x128xf32>
      %cst_51 = arith.constant -5.000000e-05 : f32
      %96 = vector.broadcast %cst_51 : f32 to vector<8x128xf32>
      %97 = arith.mulf %96, %86 : vector<8x128xf32>
      %c0_52 = arith.constant 0 : index
      %c8 = arith.constant 8 : index
      %c0_53 = arith.constant 0 : index
      %c0_54 = arith.constant 0 : index
      %98 = vector.load %arg2[%c0_52, %c8, %c0_53, %c0_54] : memref<1x24x8x128xf32, #tpu.memory_space<vmem>>, vector<1x1x8x128xf32>
      %99 = vector.shape_cast %98 : vector<1x1x8x128xf32> to vector<8x128xf32>
      %100 = vector.shape_cast %97 : vector<8x128xf32> to vector<1x1x8x128xf32>
      tpu.vector_store %arg2[%c0_52, %c8, %c0_53, %c0_54], %100 {strides = array<i32>} : memref<1x24x8x128xf32, #tpu.memory_space<vmem>>, vector<1x1x8x128xf32>,
      %c0_55 = arith.constant 0 : index
      %c9 = arith.constant 9 : index
      %c0_56 = arith.constant 0 : index
      %c0_57 = arith.constant 0 : index
      %101 = vector.load %arg2[%c0_55, %c9, %c0_56, %c0_57] : memref<1x24x8x128xf32, #tpu.memory_space<vmem>>, vector<1x1x8x128xf32>
      %102 = vector.shape_cast %101 : vector<1x1x8x128xf32> to vector<8x128xf32>
      %103 = vector.shape_cast %2 : vector<8x128xf32> to vector<1x1x8x128xf32>
      tpu.vector_store %arg2[%c0_55, %c9, %c0_56, %c0_57], %103 {strides = array<i32>} : memref<1x24x8x128xf32, #tpu.memory_space<vmem>>, vector<1x1x8x128xf32>,
      %cst_58 = arith.constant -5.000000e-05 : f32
      %104 = vector.broadcast %cst_58 : f32 to vector<8x128xf32>
      %105 = arith.mulf %104, %89 : vector<8x128xf32>
      %c0_59 = arith.constant 0 : index
      %c10 = arith.constant 10 : index
      %c0_60 = arith.constant 0 : index
      %c0_61 = arith.constant 0 : index
      %106 = vector.load %arg2[%c0_59, %c10, %c0_60, %c0_61] : memref<1x24x8x128xf32, #tpu.memory_space<vmem>>, vector<1x1x8x128xf32>
      %107 = vector.shape_cast %106 : vector<1x1x8x128xf32> to vector<8x128xf32>
      %108 = vector.shape_cast %105 : vector<8x128xf32> to vector<1x1x8x128xf32>
      tpu.vector_store %arg2[%c0_59, %c10, %c0_60, %c0_61], %108 {strides = array<i32>} : memref<1x24x8x128xf32, #tpu.memory_space<vmem>>, vector<1x1x8x128xf32>,
      %c0_62 = arith.constant 0 : index
      %c11 = arith.constant 11 : index
      %c0_63 = arith.constant 0 : index
      %c0_64 = arith.constant 0 : index
      %109 = vector.load %arg2[%c0_62, %c11, %c0_63, %c0_64] : memref<1x24x8x128xf32, #tpu.memory_space<vmem>>, vector<1x1x8x128xf32>
      %110 = vector.shape_cast %109 : vector<1x1x8x128xf32> to vector<8x128xf32>
      %111 = vector.shape_cast %2 : vector<8x128xf32> to vector<1x1x8x128xf32>
      tpu.vector_store %arg2[%c0_62, %c11, %c0_63, %c0_64], %111 {strides = array<i32>} : memref<1x24x8x128xf32, #tpu.memory_space<vmem>>, vector<1x1x8x128xf32>,
      %cst_65 = arith.constant -5.000000e-05 : f32
      %112 = vector.broadcast %cst_65 : f32 to vector<8x128xf32>
      %113 = arith.mulf %112, %92 : vector<8x128xf32>
      %c0_66 = arith.constant 0 : index
      %c12 = arith.constant 12 : index
      %c0_67 = arith.constant 0 : index
      %c0_68 = arith.constant 0 : index
      %114 = vector.load %arg2[%c0_66, %c12, %c0_67, %c0_68] : memref<1x24x8x128xf32, #tpu.memory_space<vmem>>, vector<1x1x8x128xf32>
      %115 = vector.shape_cast %114 : vector<1x1x8x128xf32> to vector<8x128xf32>
      %116 = vector.shape_cast %113 : vector<8x128xf32> to vector<1x1x8x128xf32>
      tpu.vector_store %arg2[%c0_66, %c12, %c0_67, %c0_68], %116 {strides = array<i32>} : memref<1x24x8x128xf32, #tpu.memory_space<vmem>>, vector<1x1x8x128xf32>,
      %c0_69 = arith.constant 0 : index
      %c13 = arith.constant 13 : index
      %c0_70 = arith.constant 0 : index
      %c0_71 = arith.constant 0 : index
      %117 = vector.load %arg2[%c0_69, %c13, %c0_70, %c0_71] : memref<1x24x8x128xf32, #tpu.memory_space<vmem>>, vector<1x1x8x128xf32>
      %118 = vector.shape_cast %117 : vector<1x1x8x128xf32> to vector<8x128xf32>
      %119 = vector.shape_cast %2 : vector<8x128xf32> to vector<1x1x8x128xf32>
      tpu.vector_store %arg2[%c0_69, %c13, %c0_70, %c0_71], %119 {strides = array<i32>} : memref<1x24x8x128xf32, #tpu.memory_space<vmem>>, vector<1x1x8x128xf32>,
      %cst_72 = arith.constant -5.000000e-05 : f32
      %120 = vector.broadcast %cst_72 : f32 to vector<8x128xf32>
      %121 = arith.mulf %120, %95 : vector<8x128xf32>
      %c0_73 = arith.constant 0 : index
      %c14 = arith.constant 14 : index
      %c0_74 = arith.constant 0 : index
      %c0_75 = arith.constant 0 : index
      %122 = vector.load %arg2[%c0_73, %c14, %c0_74, %c0_75] : memref<1x24x8x128xf32, #tpu.memory_space<vmem>>, vector<1x1x8x128xf32>
      %123 = vector.shape_cast %122 : vector<1x1x8x128xf32> to vector<8x128xf32>
      %124 = vector.shape_cast %121 : vector<8x128xf32> to vector<1x1x8x128xf32>
      tpu.vector_store %arg2[%c0_73, %c14, %c0_74, %c0_75], %124 {strides = array<i32>} : memref<1x24x8x128xf32, #tpu.memory_space<vmem>>, vector<1x1x8x128xf32>,
      %c0_76 = arith.constant 0 : index
      %c15 = arith.constant 15 : index
      %c0_77 = arith.constant 0 : index
      %c0_78 = arith.constant 0 : index
      %125 = vector.load %arg2[%c0_76, %c15, %c0_77, %c0_78] : memref<1x24x8x128xf32, #tpu.memory_space<vmem>>, vector<1x1x8x128xf32>
      %126 = vector.shape_cast %125 : vector<1x1x8x128xf32> to vector<8x128xf32>
      %127 = vector.shape_cast %2 : vector<8x128xf32> to vector<1x1x8x128xf32>
      tpu.vector_store %arg2[%c0_76, %c15, %c0_77, %c0_78], %127 {strides = array<i32>} : memref<1x24x8x128xf32, #tpu.memory_space<vmem>>, vector<1x1x8x128xf32>,
      %c4_i32 = arith.constant 4 : i32
      %128 = vector.broadcast %c4_i32 : i32 to vector<8x128xi32>
      %129 = arith.andi %1, %128 : vector<8x128xi32>
      %c0_i32_79 = arith.constant 0 : i32
      %130 = vector.broadcast %c0_i32_79 : i32 to vector<8x128xi32>
      %131 = arith.cmpi ne, %129, %130 : vector<8x128xi32>
      %132 = vector.broadcast %13 : f32 to vector<8x128xf32>
      %133 = vector.broadcast %12 : f32 to vector<8x128xf32>
      %134 = arith.select %131, %132, %133 : vector<8x128xi1>, vector<8x128xf32>
      %135 = vector.broadcast %15 : f32 to vector<8x128xf32>
      %136 = vector.broadcast %14 : f32 to vector<8x128xf32>
      %137 = arith.select %131, %135, %136 : vector<8x128xi1>, vector<8x128xf32>
      %138 = vector.broadcast %17 : f32 to vector<8x128xf32>
      %139 = vector.broadcast %16 : f32 to vector<8x128xf32>
      %140 = arith.select %131, %138, %139 : vector<8x128xi1>, vector<8x128xf32>
      %141 = vector.broadcast %19 : f32 to vector<8x128xf32>
      %142 = vector.broadcast %18 : f32 to vector<8x128xf32>
      %143 = arith.select %131, %141, %142 : vector<8x128xi1>, vector<8x128xf32>
      %144 = arith.mulf %86, %134 : vector<8x128xf32>
      %145 = arith.mulf %89, %140 : vector<8x128xf32>
      %146 = arith.addf %144, %145 : vector<8x128xf32>
      %147 = arith.mulf %86, %137 : vector<8x128xf32>
      %148 = arith.mulf %89, %143 : vector<8x128xf32>
      %149 = arith.addf %147, %148 : vector<8x128xf32>
      %150 = arith.mulf %92, %134 : vector<8x128xf32>
      %151 = arith.mulf %95, %140 : vector<8x128xf32>
      %152 = arith.addf %150, %151 : vector<8x128xf32>
      %153 = arith.mulf %92, %137 : vector<8x128xf32>
      %154 = arith.mulf %95, %143 : vector<8x128xf32>
      %155 = arith.addf %153, %154 : vector<8x128xf32>
      %cst_80 = arith.constant 1.66666666E-7 : f32
      %156 = vector.broadcast %cst_80 : f32 to vector<8x128xf32>
      %157 = arith.mulf %156, %146 : vector<8x128xf32>
      %c0_81 = arith.constant 0 : index
      %c16 = arith.constant 16 : index
      %c0_82 = arith.constant 0 : index
      %c0_83 = arith.constant 0 : index
      %158 = vector.load %arg2[%c0_81, %c16, %c0_82, %c0_83] : memref<1x24x8x128xf32, #tpu.memory_space<vmem>>, vector<1x1x8x128xf32>
      %159 = vector.shape_cast %158 : vector<1x1x8x128xf32> to vector<8x128xf32>
      %160 = vector.shape_cast %2 : vector<8x128xf32> to vector<1x1x8x128xf32>
      tpu.vector_store %arg2[%c0_81, %c16, %c0_82, %c0_83], %160 {strides = array<i32>} : memref<1x24x8x128xf32, #tpu.memory_space<vmem>>, vector<1x1x8x128xf32>,
      %c0_84 = arith.constant 0 : index
      %c17 = arith.constant 17 : index
      %c0_85 = arith.constant 0 : index
      %c0_86 = arith.constant 0 : index
      %161 = vector.load %arg2[%c0_84, %c17, %c0_85, %c0_86] : memref<1x24x8x128xf32, #tpu.memory_space<vmem>>, vector<1x1x8x128xf32>
      %162 = vector.shape_cast %161 : vector<1x1x8x128xf32> to vector<8x128xf32>
      %163 = vector.shape_cast %157 : vector<8x128xf32> to vector<1x1x8x128xf32>
      tpu.vector_store %arg2[%c0_84, %c17, %c0_85, %c0_86], %163 {strides = array<i32>} : memref<1x24x8x128xf32, #tpu.memory_space<vmem>>, vector<1x1x8x128xf32>,
      %cst_87 = arith.constant 1.66666666E-7 : f32
      %164 = vector.broadcast %cst_87 : f32 to vector<8x128xf32>
      %165 = arith.mulf %164, %149 : vector<8x128xf32>
      %c0_88 = arith.constant 0 : index
      %c18 = arith.constant 18 : index
      %c0_89 = arith.constant 0 : index
      %c0_90 = arith.constant 0 : index
      %166 = vector.load %arg2[%c0_88, %c18, %c0_89, %c0_90] : memref<1x24x8x128xf32, #tpu.memory_space<vmem>>, vector<1x1x8x128xf32>
      %167 = vector.shape_cast %166 : vector<1x1x8x128xf32> to vector<8x128xf32>
      %168 = vector.shape_cast %2 : vector<8x128xf32> to vector<1x1x8x128xf32>
      tpu.vector_store %arg2[%c0_88, %c18, %c0_89, %c0_90], %168 {strides = array<i32>} : memref<1x24x8x128xf32, #tpu.memory_space<vmem>>, vector<1x1x8x128xf32>,
      %c0_91 = arith.constant 0 : index
      %c19 = arith.constant 19 : index
      %c0_92 = arith.constant 0 : index
      %c0_93 = arith.constant 0 : index
      %169 = vector.load %arg2[%c0_91, %c19, %c0_92, %c0_93] : memref<1x24x8x128xf32, #tpu.memory_space<vmem>>, vector<1x1x8x128xf32>
      %170 = vector.shape_cast %169 : vector<1x1x8x128xf32> to vector<8x128xf32>
      %171 = vector.shape_cast %165 : vector<8x128xf32> to vector<1x1x8x128xf32>
      tpu.vector_store %arg2[%c0_91, %c19, %c0_92, %c0_93], %171 {strides = array<i32>} : memref<1x24x8x128xf32, #tpu.memory_space<vmem>>, vector<1x1x8x128xf32>,
      %cst_94 = arith.constant 1.66666666E-7 : f32
      %172 = vector.broadcast %cst_94 : f32 to vector<8x128xf32>
      %173 = arith.mulf %172, %152 : vector<8x128xf32>
      %c0_95 = arith.constant 0 : index
      %c20 = arith.constant 20 : index
      %c0_96 = arith.constant 0 : index
      %c0_97 = arith.constant 0 : index
      %174 = vector.load %arg2[%c0_95, %c20, %c0_96, %c0_97] : memref<1x24x8x128xf32, #tpu.memory_space<vmem>>, vector<1x1x8x128xf32>
      %175 = vector.shape_cast %174 : vector<1x1x8x128xf32> to vector<8x128xf32>
      %176 = vector.shape_cast %2 : vector<8x128xf32> to vector<1x1x8x128xf32>
      tpu.vector_store %arg2[%c0_95, %c20, %c0_96, %c0_97], %176 {strides = array<i32>} : memref<1x24x8x128xf32, #tpu.memory_space<vmem>>, vector<1x1x8x128xf32>,
      %c0_98 = arith.constant 0 : index
      %c21 = arith.constant 21 : index
      %c0_99 = arith.constant 0 : index
      %c0_100 = arith.constant 0 : index
      %177 = vector.load %arg2[%c0_98, %c21, %c0_99, %c0_100] : memref<1x24x8x128xf32, #tpu.memory_space<vmem>>, vector<1x1x8x128xf32>
      %178 = vector.shape_cast %177 : vector<1x1x8x128xf32> to vector<8x128xf32>
      %179 = vector.shape_cast %173 : vector<8x128xf32> to vector<1x1x8x128xf32>
      tpu.vector_store %arg2[%c0_98, %c21, %c0_99, %c0_100], %179 {strides = array<i32>} : memref<1x24x8x128xf32, #tpu.memory_space<vmem>>, vector<1x1x8x128xf32>,
      %cst_101 = arith.constant 1.66666666E-7 : f32
      %180 = vector.broadcast %cst_101 : f32 to vector<8x128xf32>
      %181 = arith.mulf %180, %155 : vector<8x128xf32>
      %c0_102 = arith.constant 0 : index
      %c22 = arith.constant 22 : index
      %c0_103 = arith.constant 0 : index
      %c0_104 = arith.constant 0 : index
      %182 = vector.load %arg2[%c0_102, %c22, %c0_103, %c0_104] : memref<1x24x8x128xf32, #tpu.memory_space<vmem>>, vector<1x1x8x128xf32>
      %183 = vector.shape_cast %182 : vector<1x1x8x128xf32> to vector<8x128xf32>
      %184 = vector.shape_cast %2 : vector<8x128xf32> to vector<1x1x8x128xf32>
      tpu.vector_store %arg2[%c0_102, %c22, %c0_103, %c0_104], %184 {strides = array<i32>} : memref<1x24x8x128xf32, #tpu.memory_space<vmem>>, vector<1x1x8x128xf32>,
      %c0_105 = arith.constant 0 : index
      %c23 = arith.constant 23 : index
      %c0_106 = arith.constant 0 : index
      %c0_107 = arith.constant 0 : index
      %185 = vector.load %arg2[%c0_105, %c23, %c0_106, %c0_107] : memref<1x24x8x128xf32, #tpu.memory_space<vmem>>, vector<1x1x8x128xf32>
      %186 = vector.shape_cast %185 : vector<1x1x8x128xf32> to vector<8x128xf32>
      %187 = vector.shape_cast %181 : vector<8x128xf32> to vector<1x1x8x128xf32>
      tpu.vector_store %arg2[%c0_105, %c23, %c0_106, %c0_107], %187 {strides = array<i32>} : memref<1x24x8x128xf32, #tpu.memory_space<vmem>>, vector<1x1x8x128xf32>,
    } else {
    }
    %c1_i32 = arith.constant 1 : i32
    %6 = arith.cmpi eq, %arg0, %c1_i32 : i32
    %7 = arith.extui %6 : i1 to i32
    %c0_i32_1 = arith.constant 0 : i32
    %8 = arith.cmpi ne, %7, %c0_i32_1 : i32
    scf.if %8 {
      %c1 = arith.constant 1 : index
      %c0 = arith.constant 0 : index
      %12 = memref.load %arg1[%c1, %c0] : memref<3x16xf32, #tpu.memory_space<smem>>
      %c1_3 = arith.constant 1 : index
      %c2 = arith.constant 2 : index
      %13 = memref.load %arg1[%c1_3, %c2] : memref<3x16xf32, #tpu.memory_space<smem>>
      %c1_4 = arith.constant 1 : index
      %c4 = arith.constant 4 : index
      %14 = memref.load %arg1[%c1_4, %c4] : memref<3x16xf32, #tpu.memory_space<smem>>
      %c1_5 = arith.constant 1 : index
      %c6 = arith.constant 6 : index
      %15 = memref.load %arg1[%c1_5, %c6] : memref<3x16xf32, #tpu.memory_space<smem>>
      %c1_6 = arith.constant 1 : index
      %c8 = arith.constant 8 : index
      %16 = memref.load %arg1[%c1_6, %c8] : memref<3x16xf32, #tpu.memory_space<smem>>
      %c1_7 = arith.constant 1 : index
      %c10 = arith.constant 10 : index
      %17 = memref.load %arg1[%c1_7, %c10] : memref<3x16xf32, #tpu.memory_space<smem>>
      %c1_8 = arith.constant 1 : index
      %c12 = arith.constant 12 : index
      %18 = memref.load %arg1[%c1_8, %c12] : memref<3x16xf32, #tpu.memory_space<smem>>
      %c1_9 = arith.constant 1 : index
      %c14 = arith.constant 14 : index
      %19 = memref.load %arg1[%c1_9, %c14] : memref<3x16xf32, #tpu.memory_space<smem>>
      %c1_i32_10 = arith.constant 1 : i32
      %20 = vector.broadcast %c1_i32_10 : i32 to vector<8x128xi32>
      %21 = arith.andi %0, %20 : vector<8x128xi32>
      %c0_i32_11 = arith.constant 0 : i32
      %22 = vector.broadcast %c0_i32_11 : i32 to vector<8x128xi32>
      %23 = arith.cmpi ne, %21, %22 : vector<8x128xi32>
      %24 = vector.broadcast %16 : f32 to vector<8x128xf32>
      %25 = arith.addf %2, %24 : vector<8x128xf32>
      %26 = vector.broadcast %12 : f32 to vector<8x128xf32>
      %27 = arith.addf %2, %26 : vector<8x128xf32>
      %28 = arith.select %23, %25, %27 : vector<8x128xi1>, vector<8x128xf32>
      %29 = vector.broadcast %17 : f32 to vector<8x128xf32>
      %30 = arith.addf %2, %29 : vector<8x128xf32>
      %31 = vector.broadcast %13 : f32 to vector<8x128xf32>
      %32 = arith.addf %2, %31 : vector<8x128xf32>
      %33 = arith.select %23, %30, %32 : vector<8x128xi1>, vector<8x128xf32>
      %34 = vector.broadcast %18 : f32 to vector<8x128xf32>
      %35 = arith.addf %2, %34 : vector<8x128xf32>
      %36 = vector.broadcast %14 : f32 to vector<8x128xf32>
      %37 = arith.addf %2, %36 : vector<8x128xf32>
      %38 = arith.select %23, %35, %37 : vector<8x128xi1>, vector<8x128xf32>
      %39 = vector.broadcast %19 : f32 to vector<8x128xf32>
      %40 = arith.addf %2, %39 : vector<8x128xf32>
      %41 = vector.broadcast %15 : f32 to vector<8x128xf32>
      %42 = arith.addf %2, %41 : vector<8x128xf32>
      %43 = arith.select %23, %40, %42 : vector<8x128xi1>, vector<8x128xf32>
      %c0_12 = arith.constant 0 : index
      %c0_13 = arith.constant 0 : index
      %c0_14 = arith.constant 0 : index
      %c0_15 = arith.constant 0 : index
      %44 = vector.load %arg2[%c0_12, %c0_13, %c0_14, %c0_15] : memref<1x24x8x128xf32, #tpu.memory_space<vmem>>, vector<1x1x8x128xf32>
      %45 = vector.shape_cast %44 : vector<1x1x8x128xf32> to vector<8x128xf32>
      %46 = vector.shape_cast %28 : vector<8x128xf32> to vector<1x1x8x128xf32>
      tpu.vector_store %arg2[%c0_12, %c0_13, %c0_14, %c0_15], %46 {strides = array<i32>} : memref<1x24x8x128xf32, #tpu.memory_space<vmem>>, vector<1x1x8x128xf32>,
      %c0_16 = arith.constant 0 : index
      %c1_17 = arith.constant 1 : index
      %c0_18 = arith.constant 0 : index
      %c0_19 = arith.constant 0 : index
      %47 = vector.load %arg2[%c0_16, %c1_17, %c0_18, %c0_19] : memref<1x24x8x128xf32, #tpu.memory_space<vmem>>, vector<1x1x8x128xf32>
      %48 = vector.shape_cast %47 : vector<1x1x8x128xf32> to vector<8x128xf32>
      %49 = vector.shape_cast %2 : vector<8x128xf32> to vector<1x1x8x128xf32>
      tpu.vector_store %arg2[%c0_16, %c1_17, %c0_18, %c0_19], %49 {strides = array<i32>} : memref<1x24x8x128xf32, #tpu.memory_space<vmem>>, vector<1x1x8x128xf32>,
      %c0_20 = arith.constant 0 : index
      %c2_21 = arith.constant 2 : index
      %c0_22 = arith.constant 0 : index
      %c0_23 = arith.constant 0 : index
      %50 = vector.load %arg2[%c0_20, %c2_21, %c0_22, %c0_23] : memref<1x24x8x128xf32, #tpu.memory_space<vmem>>, vector<1x1x8x128xf32>
      %51 = vector.shape_cast %50 : vector<1x1x8x128xf32> to vector<8x128xf32>
      %52 = vector.shape_cast %33 : vector<8x128xf32> to vector<1x1x8x128xf32>
      tpu.vector_store %arg2[%c0_20, %c2_21, %c0_22, %c0_23], %52 {strides = array<i32>} : memref<1x24x8x128xf32, #tpu.memory_space<vmem>>, vector<1x1x8x128xf32>,
      %c0_24 = arith.constant 0 : index
      %c3 = arith.constant 3 : index
      %c0_25 = arith.constant 0 : index
      %c0_26 = arith.constant 0 : index
      %53 = vector.load %arg2[%c0_24, %c3, %c0_25, %c0_26] : memref<1x24x8x128xf32, #tpu.memory_space<vmem>>, vector<1x1x8x128xf32>
      %54 = vector.shape_cast %53 : vector<1x1x8x128xf32> to vector<8x128xf32>
      %55 = vector.shape_cast %2 : vector<8x128xf32> to vector<1x1x8x128xf32>
      tpu.vector_store %arg2[%c0_24, %c3, %c0_25, %c0_26], %55 {strides = array<i32>} : memref<1x24x8x128xf32, #tpu.memory_space<vmem>>, vector<1x1x8x128xf32>,
      %c0_27 = arith.constant 0 : index
      %c4_28 = arith.constant 4 : index
      %c0_29 = arith.constant 0 : index
      %c0_30 = arith.constant 0 : index
      %56 = vector.load %arg2[%c0_27, %c4_28, %c0_29, %c0_30] : memref<1x24x8x128xf32, #tpu.memory_space<vmem>>, vector<1x1x8x128xf32>
      %57 = vector.shape_cast %56 : vector<1x1x8x128xf32> to vector<8x128xf32>
      %58 = vector.shape_cast %38 : vector<8x128xf32> to vector<1x1x8x128xf32>
      tpu.vector_store %arg2[%c0_27, %c4_28, %c0_29, %c0_30], %58 {strides = array<i32>} : memref<1x24x8x128xf32, #tpu.memory_space<vmem>>, vector<1x1x8x128xf32>,
      %c0_31 = arith.constant 0 : index
      %c5 = arith.constant 5 : index
      %c0_32 = arith.constant 0 : index
      %c0_33 = arith.constant 0 : index
      %59 = vector.load %arg2[%c0_31, %c5, %c0_32, %c0_33] : memref<1x24x8x128xf32, #tpu.memory_space<vmem>>, vector<1x1x8x128xf32>
      %60 = vector.shape_cast %59 : vector<1x1x8x128xf32> to vector<8x128xf32>
      %61 = vector.shape_cast %2 : vector<8x128xf32> to vector<1x1x8x128xf32>
      tpu.vector_store %arg2[%c0_31, %c5, %c0_32, %c0_33], %61 {strides = array<i32>} : memref<1x24x8x128xf32, #tpu.memory_space<vmem>>, vector<1x1x8x128xf32>,
      %c0_34 = arith.constant 0 : index
      %c6_35 = arith.constant 6 : index
      %c0_36 = arith.constant 0 : index
      %c0_37 = arith.constant 0 : index
      %62 = vector.load %arg2[%c0_34, %c6_35, %c0_36, %c0_37] : memref<1x24x8x128xf32, #tpu.memory_space<vmem>>, vector<1x1x8x128xf32>
      %63 = vector.shape_cast %62 : vector<1x1x8x128xf32> to vector<8x128xf32>
      %64 = vector.shape_cast %43 : vector<8x128xf32> to vector<1x1x8x128xf32>
      tpu.vector_store %arg2[%c0_34, %c6_35, %c0_36, %c0_37], %64 {strides = array<i32>} : memref<1x24x8x128xf32, #tpu.memory_space<vmem>>, vector<1x1x8x128xf32>,
      %c0_38 = arith.constant 0 : index
      %c7 = arith.constant 7 : index
      %c0_39 = arith.constant 0 : index
      %c0_40 = arith.constant 0 : index
      %65 = vector.load %arg2[%c0_38, %c7, %c0_39, %c0_40] : memref<1x24x8x128xf32, #tpu.memory_space<vmem>>, vector<1x1x8x128xf32>
      %66 = vector.shape_cast %65 : vector<1x1x8x128xf32> to vector<8x128xf32>
      %67 = vector.shape_cast %2 : vector<8x128xf32> to vector<1x1x8x128xf32>
      tpu.vector_store %arg2[%c0_38, %c7, %c0_39, %c0_40], %67 {strides = array<i32>} : memref<1x24x8x128xf32, #tpu.memory_space<vmem>>, vector<1x1x8x128xf32>,
      %c2_i32_41 = arith.constant 2 : i32
      %68 = vector.broadcast %c2_i32_41 : i32 to vector<8x128xi32>
      %69 = arith.andi %0, %68 : vector<8x128xi32>
      %c0_i32_42 = arith.constant 0 : i32
      %70 = vector.broadcast %c0_i32_42 : i32 to vector<8x128xi32>
      %71 = arith.cmpi ne, %69, %70 : vector<8x128xi32>
      %72 = vector.broadcast %16 : f32 to vector<8x128xf32>
      %73 = arith.addf %2, %72 : vector<8x128xf32>
      %74 = vector.broadcast %12 : f32 to vector<8x128xf32>
      %75 = arith.addf %2, %74 : vector<8x128xf32>
      %76 = arith.select %71, %73, %75 : vector<8x128xi1>, vector<8x128xf32>
      %77 = vector.broadcast %17 : f32 to vector<8x128xf32>
      %78 = arith.addf %2, %77 : vector<8x128xf32>
      %79 = vector.broadcast %13 : f32 to vector<8x128xf32>
      %80 = arith.addf %2, %79 : vector<8x128xf32>
      %81 = arith.select %71, %78, %80 : vector<8x128xi1>, vector<8x128xf32>
      %82 = vector.broadcast %18 : f32 to vector<8x128xf32>
      %83 = arith.addf %2, %82 : vector<8x128xf32>
      %84 = vector.broadcast %14 : f32 to vector<8x128xf32>
      %85 = arith.addf %2, %84 : vector<8x128xf32>
      %86 = arith.select %71, %83, %85 : vector<8x128xi1>, vector<8x128xf32>
      %87 = vector.broadcast %19 : f32 to vector<8x128xf32>
      %88 = arith.addf %2, %87 : vector<8x128xf32>
      %89 = vector.broadcast %15 : f32 to vector<8x128xf32>
      %90 = arith.addf %2, %89 : vector<8x128xf32>
      %91 = arith.select %71, %88, %90 : vector<8x128xi1>, vector<8x128xf32>
      %92 = arith.mulf %28, %76 : vector<8x128xf32>
      %93 = arith.mulf %33, %86 : vector<8x128xf32>
      %94 = arith.addf %92, %93 : vector<8x128xf32>
      %95 = arith.mulf %28, %81 : vector<8x128xf32>
      %96 = arith.mulf %33, %91 : vector<8x128xf32>
      %97 = arith.addf %95, %96 : vector<8x128xf32>
      %98 = arith.mulf %38, %76 : vector<8x128xf32>
      %99 = arith.mulf %43, %86 : vector<8x128xf32>
      %100 = arith.addf %98, %99 : vector<8x128xf32>
      %101 = arith.mulf %38, %81 : vector<8x128xf32>
      %102 = arith.mulf %43, %91 : vector<8x128xf32>
      %103 = arith.addf %101, %102 : vector<8x128xf32>
      %c0_43 = arith.constant 0 : index
      %c8_44 = arith.constant 8 : index
      %c0_45 = arith.constant 0 : index
      %c0_46 = arith.constant 0 : index
      %104 = vector.load %arg2[%c0_43, %c8_44, %c0_45, %c0_46] : memref<1x24x8x128xf32, #tpu.memory_space<vmem>>, vector<1x1x8x128xf32>
      %105 = vector.shape_cast %104 : vector<1x1x8x128xf32> to vector<8x128xf32>
      %106 = vector.shape_cast %94 : vector<8x128xf32> to vector<1x1x8x128xf32>
      tpu.vector_store %arg2[%c0_43, %c8_44, %c0_45, %c0_46], %106 {strides = array<i32>} : memref<1x24x8x128xf32, #tpu.memory_space<vmem>>, vector<1x1x8x128xf32>,
      %c0_47 = arith.constant 0 : index
      %c9 = arith.constant 9 : index
      %c0_48 = arith.constant 0 : index
      %c0_49 = arith.constant 0 : index
      %107 = vector.load %arg2[%c0_47, %c9, %c0_48, %c0_49] : memref<1x24x8x128xf32, #tpu.memory_space<vmem>>, vector<1x1x8x128xf32>
      %108 = vector.shape_cast %107 : vector<1x1x8x128xf32> to vector<8x128xf32>
      %109 = vector.shape_cast %2 : vector<8x128xf32> to vector<1x1x8x128xf32>
      tpu.vector_store %arg2[%c0_47, %c9, %c0_48, %c0_49], %109 {strides = array<i32>} : memref<1x24x8x128xf32, #tpu.memory_space<vmem>>, vector<1x1x8x128xf32>,
      %c0_50 = arith.constant 0 : index
      %c10_51 = arith.constant 10 : index
      %c0_52 = arith.constant 0 : index
      %c0_53 = arith.constant 0 : index
      %110 = vector.load %arg2[%c0_50, %c10_51, %c0_52, %c0_53] : memref<1x24x8x128xf32, #tpu.memory_space<vmem>>, vector<1x1x8x128xf32>
      %111 = vector.shape_cast %110 : vector<1x1x8x128xf32> to vector<8x128xf32>
      %112 = vector.shape_cast %97 : vector<8x128xf32> to vector<1x1x8x128xf32>
      tpu.vector_store %arg2[%c0_50, %c10_51, %c0_52, %c0_53], %112 {strides = array<i32>} : memref<1x24x8x128xf32, #tpu.memory_space<vmem>>, vector<1x1x8x128xf32>,
      %c0_54 = arith.constant 0 : index
      %c11 = arith.constant 11 : index
      %c0_55 = arith.constant 0 : index
      %c0_56 = arith.constant 0 : index
      %113 = vector.load %arg2[%c0_54, %c11, %c0_55, %c0_56] : memref<1x24x8x128xf32, #tpu.memory_space<vmem>>, vector<1x1x8x128xf32>
      %114 = vector.shape_cast %113 : vector<1x1x8x128xf32> to vector<8x128xf32>
      %115 = vector.shape_cast %2 : vector<8x128xf32> to vector<1x1x8x128xf32>
      tpu.vector_store %arg2[%c0_54, %c11, %c0_55, %c0_56], %115 {strides = array<i32>} : memref<1x24x8x128xf32, #tpu.memory_space<vmem>>, vector<1x1x8x128xf32>,
      %c0_57 = arith.constant 0 : index
      %c12_58 = arith.constant 12 : index
      %c0_59 = arith.constant 0 : index
      %c0_60 = arith.constant 0 : index
      %116 = vector.load %arg2[%c0_57, %c12_58, %c0_59, %c0_60] : memref<1x24x8x128xf32, #tpu.memory_space<vmem>>, vector<1x1x8x128xf32>
      %117 = vector.shape_cast %116 : vector<1x1x8x128xf32> to vector<8x128xf32>
      %118 = vector.shape_cast %100 : vector<8x128xf32> to vector<1x1x8x128xf32>
      tpu.vector_store %arg2[%c0_57, %c12_58, %c0_59, %c0_60], %118 {strides = array<i32>} : memref<1x24x8x128xf32, #tpu.memory_space<vmem>>, vector<1x1x8x128xf32>,
      %c0_61 = arith.constant 0 : index
      %c13 = arith.constant 13 : index
      %c0_62 = arith.constant 0 : index
      %c0_63 = arith.constant 0 : index
      %119 = vector.load %arg2[%c0_61, %c13, %c0_62, %c0_63] : memref<1x24x8x128xf32, #tpu.memory_space<vmem>>, vector<1x1x8x128xf32>
      %120 = vector.shape_cast %119 : vector<1x1x8x128xf32> to vector<8x128xf32>
      %121 = vector.shape_cast %2 : vector<8x128xf32> to vector<1x1x8x128xf32>
      tpu.vector_store %arg2[%c0_61, %c13, %c0_62, %c0_63], %121 {strides = array<i32>} : memref<1x24x8x128xf32, #tpu.memory_space<vmem>>, vector<1x1x8x128xf32>,
      %c0_64 = arith.constant 0 : index
      %c14_65 = arith.constant 14 : index
      %c0_66 = arith.constant 0 : index
      %c0_67 = arith.constant 0 : index
      %122 = vector.load %arg2[%c0_64, %c14_65, %c0_66, %c0_67] : memref<1x24x8x128xf32, #tpu.memory_space<vmem>>, vector<1x1x8x128xf32>
      %123 = vector.shape_cast %122 : vector<1x1x8x128xf32> to vector<8x128xf32>
      %124 = vector.shape_cast %103 : vector<8x128xf32> to vector<1x1x8x128xf32>
      tpu.vector_store %arg2[%c0_64, %c14_65, %c0_66, %c0_67], %124 {strides = array<i32>} : memref<1x24x8x128xf32, #tpu.memory_space<vmem>>, vector<1x1x8x128xf32>,
      %c0_68 = arith.constant 0 : index
      %c15 = arith.constant 15 : index
      %c0_69 = arith.constant 0 : index
      %c0_70 = arith.constant 0 : index
      %125 = vector.load %arg2[%c0_68, %c15, %c0_69, %c0_70] : memref<1x24x8x128xf32, #tpu.memory_space<vmem>>, vector<1x1x8x128xf32>
      %126 = vector.shape_cast %125 : vector<1x1x8x128xf32> to vector<8x128xf32>
      %127 = vector.shape_cast %2 : vector<8x128xf32> to vector<1x1x8x128xf32>
      tpu.vector_store %arg2[%c0_68, %c15, %c0_69, %c0_70], %127 {strides = array<i32>} : memref<1x24x8x128xf32, #tpu.memory_space<vmem>>, vector<1x1x8x128xf32>,
      %c4_i32 = arith.constant 4 : i32
      %128 = vector.broadcast %c4_i32 : i32 to vector<8x128xi32>
      %129 = arith.andi %0, %128 : vector<8x128xi32>
      %c0_i32_71 = arith.constant 0 : i32
      %130 = vector.broadcast %c0_i32_71 : i32 to vector<8x128xi32>
      %131 = arith.cmpi ne, %129, %130 : vector<8x128xi32>
      %132 = vector.broadcast %16 : f32 to vector<8x128xf32>
      %133 = arith.addf %2, %132 : vector<8x128xf32>
      %134 = vector.broadcast %12 : f32 to vector<8x128xf32>
      %135 = arith.addf %2, %134 : vector<8x128xf32>
      %136 = arith.select %131, %133, %135 : vector<8x128xi1>, vector<8x128xf32>
      %137 = vector.broadcast %17 : f32 to vector<8x128xf32>
      %138 = arith.addf %2, %137 : vector<8x128xf32>
      %139 = vector.broadcast %13 : f32 to vector<8x128xf32>
      %140 = arith.addf %2, %139 : vector<8x128xf32>
      %141 = arith.select %131, %138, %140 : vector<8x128xi1>, vector<8x128xf32>
      %142 = vector.broadcast %18 : f32 to vector<8x128xf32>
      %143 = arith.addf %2, %142 : vector<8x128xf32>
      %144 = vector.broadcast %14 : f32 to vector<8x128xf32>
      %145 = arith.addf %2, %144 : vector<8x128xf32>
      %146 = arith.select %131, %143, %145 : vector<8x128xi1>, vector<8x128xf32>
      %147 = vector.broadcast %19 : f32 to vector<8x128xf32>
      %148 = arith.addf %2, %147 : vector<8x128xf32>
      %149 = vector.broadcast %15 : f32 to vector<8x128xf32>
      %150 = arith.addf %2, %149 : vector<8x128xf32>
      %151 = arith.select %131, %148, %150 : vector<8x128xi1>, vector<8x128xf32>
      %152 = arith.mulf %94, %136 : vector<8x128xf32>
      %153 = arith.mulf %97, %146 : vector<8x128xf32>
      %154 = arith.addf %152, %153 : vector<8x128xf32>
      %155 = arith.mulf %94, %141 : vector<8x128xf32>
      %156 = arith.mulf %97, %151 : vector<8x128xf32>
      %157 = arith.addf %155, %156 : vector<8x128xf32>
      %158 = arith.mulf %100, %136 : vector<8x128xf32>
      %159 = arith.mulf %103, %146 : vector<8x128xf32>
      %160 = arith.addf %158, %159 : vector<8x128xf32>
      %161 = arith.mulf %100, %141 : vector<8x128xf32>
      %162 = arith.mulf %103, %151 : vector<8x128xf32>
      %163 = arith.addf %161, %162 : vector<8x128xf32>
      %c0_72 = arith.constant 0 : index
      %c16 = arith.constant 16 : index
      %c0_73 = arith.constant 0 : index
      %c0_74 = arith.constant 0 : index
      %164 = vector.load %arg2[%c0_72, %c16, %c0_73, %c0_74] : memref<1x24x8x128xf32, #tpu.memory_space<vmem>>, vector<1x1x8x128xf32>
      %165 = vector.shape_cast %164 : vector<1x1x8x128xf32> to vector<8x128xf32>
      %166 = vector.shape_cast %154 : vector<8x128xf32> to vector<1x1x8x128xf32>
      tpu.vector_store %arg2[%c0_72, %c16, %c0_73, %c0_74], %166 {strides = array<i32>} : memref<1x24x8x128xf32, #tpu.memory_space<vmem>>, vector<1x1x8x128xf32>,
      %c0_75 = arith.constant 0 : index
      %c17 = arith.constant 17 : index
      %c0_76 = arith.constant 0 : index
      %c0_77 = arith.constant 0 : index
      %167 = vector.load %arg2[%c0_75, %c17, %c0_76, %c0_77] : memref<1x24x8x128xf32, #tpu.memory_space<vmem>>, vector<1x1x8x128xf32>
      %168 = vector.shape_cast %167 : vector<1x1x8x128xf32> to vector<8x128xf32>
      %169 = vector.shape_cast %2 : vector<8x128xf32> to vector<1x1x8x128xf32>
      tpu.vector_store %arg2[%c0_75, %c17, %c0_76, %c0_77], %169 {strides = array<i32>} : memref<1x24x8x128xf32, #tpu.memory_space<vmem>>, vector<1x1x8x128xf32>,
      %c0_78 = arith.constant 0 : index
      %c18 = arith.constant 18 : index
      %c0_79 = arith.constant 0 : index
      %c0_80 = arith.constant 0 : index
      %170 = vector.load %arg2[%c0_78, %c18, %c0_79, %c0_80] : memref<1x24x8x128xf32, #tpu.memory_space<vmem>>, vector<1x1x8x128xf32>
      %171 = vector.shape_cast %170 : vector<1x1x8x128xf32> to vector<8x128xf32>
      %172 = vector.shape_cast %157 : vector<8x128xf32> to vector<1x1x8x128xf32>
      tpu.vector_store %arg2[%c0_78, %c18, %c0_79, %c0_80], %172 {strides = array<i32>} : memref<1x24x8x128xf32, #tpu.memory_space<vmem>>, vector<1x1x8x128xf32>,
      %c0_81 = arith.constant 0 : index
      %c19 = arith.constant 19 : index
      %c0_82 = arith.constant 0 : index
      %c0_83 = arith.constant 0 : index
      %173 = vector.load %arg2[%c0_81, %c19, %c0_82, %c0_83] : memref<1x24x8x128xf32, #tpu.memory_space<vmem>>, vector<1x1x8x128xf32>
      %174 = vector.shape_cast %173 : vector<1x1x8x128xf32> to vector<8x128xf32>
      %175 = vector.shape_cast %2 : vector<8x128xf32> to vector<1x1x8x128xf32>
      tpu.vector_store %arg2[%c0_81, %c19, %c0_82, %c0_83], %175 {strides = array<i32>} : memref<1x24x8x128xf32, #tpu.memory_space<vmem>>, vector<1x1x8x128xf32>,
      %c0_84 = arith.constant 0 : index
      %c20 = arith.constant 20 : index
      %c0_85 = arith.constant 0 : index
      %c0_86 = arith.constant 0 : index
      %176 = vector.load %arg2[%c0_84, %c20, %c0_85, %c0_86] : memref<1x24x8x128xf32, #tpu.memory_space<vmem>>, vector<1x1x8x128xf32>
      %177 = vector.shape_cast %176 : vector<1x1x8x128xf32> to vector<8x128xf32>
      %178 = vector.shape_cast %160 : vector<8x128xf32> to vector<1x1x8x128xf32>
      tpu.vector_store %arg2[%c0_84, %c20, %c0_85, %c0_86], %178 {strides = array<i32>} : memref<1x24x8x128xf32, #tpu.memory_space<vmem>>, vector<1x1x8x128xf32>,
      %c0_87 = arith.constant 0 : index
      %c21 = arith.constant 21 : index
      %c0_88 = arith.constant 0 : index
      %c0_89 = arith.constant 0 : index
      %179 = vector.load %arg2[%c0_87, %c21, %c0_88, %c0_89] : memref<1x24x8x128xf32, #tpu.memory_space<vmem>>, vector<1x1x8x128xf32>
      %180 = vector.shape_cast %179 : vector<1x1x8x128xf32> to vector<8x128xf32>
      %181 = vector.shape_cast %2 : vector<8x128xf32> to vector<1x1x8x128xf32>
      tpu.vector_store %arg2[%c0_87, %c21, %c0_88, %c0_89], %181 {strides = array<i32>} : memref<1x24x8x128xf32, #tpu.memory_space<vmem>>, vector<1x1x8x128xf32>,
      %c0_90 = arith.constant 0 : index
      %c22 = arith.constant 22 : index
      %c0_91 = arith.constant 0 : index
      %c0_92 = arith.constant 0 : index
      %182 = vector.load %arg2[%c0_90, %c22, %c0_91, %c0_92] : memref<1x24x8x128xf32, #tpu.memory_space<vmem>>, vector<1x1x8x128xf32>
      %183 = vector.shape_cast %182 : vector<1x1x8x128xf32> to vector<8x128xf32>
      %184 = vector.shape_cast %163 : vector<8x128xf32> to vector<1x1x8x128xf32>
      tpu.vector_store %arg2[%c0_90, %c22, %c0_91, %c0_92], %184 {strides = array<i32>} : memref<1x24x8x128xf32, #tpu.memory_space<vmem>>, vector<1x1x8x128xf32>,
      %c0_93 = arith.constant 0 : index
      %c23 = arith.constant 23 : index
      %c0_94 = arith.constant 0 : index
      %c0_95 = arith.constant 0 : index
      %185 = vector.load %arg2[%c0_93, %c23, %c0_94, %c0_95] : memref<1x24x8x128xf32, #tpu.memory_space<vmem>>, vector<1x1x8x128xf32>
      %186 = vector.shape_cast %185 : vector<1x1x8x128xf32> to vector<8x128xf32>
      %187 = vector.shape_cast %2 : vector<8x128xf32> to vector<1x1x8x128xf32>
      tpu.vector_store %arg2[%c0_93, %c23, %c0_94, %c0_95], %187 {strides = array<i32>} : memref<1x24x8x128xf32, #tpu.memory_space<vmem>>, vector<1x1x8x128xf32>,
    } else {
    }
    %c2_i32 = arith.constant 2 : i32
    %9 = arith.cmpi eq, %arg0, %c2_i32 : i32
    %10 = arith.extui %9 : i1 to i32
    %c0_i32_2 = arith.constant 0 : i32
    %11 = arith.cmpi ne, %10, %c0_i32_2 : i32
    scf.if %11 {
      %c2 = arith.constant 2 : index
      %c0 = arith.constant 0 : index
      %12 = memref.load %arg1[%c2, %c0] : memref<3x16xf32, #tpu.memory_space<smem>>
      %c2_3 = arith.constant 2 : index
      %c1 = arith.constant 1 : index
      %13 = memref.load %arg1[%c2_3, %c1] : memref<3x16xf32, #tpu.memory_space<smem>>
      %c2_4 = arith.constant 2 : index
      %c2_5 = arith.constant 2 : index
      %14 = memref.load %arg1[%c2_4, %c2_5] : memref<3x16xf32, #tpu.memory_space<smem>>
      %c2_6 = arith.constant 2 : index
      %c3 = arith.constant 3 : index
      %15 = memref.load %arg1[%c2_6, %c3] : memref<3x16xf32, #tpu.memory_space<smem>>
      %c2_7 = arith.constant 2 : index
      %c4 = arith.constant 4 : index
      %16 = memref.load %arg1[%c2_7, %c4] : memref<3x16xf32, #tpu.memory_space<smem>>
      %c2_8 = arith.constant 2 : index
      %c5 = arith.constant 5 : index
      %17 = memref.load %arg1[%c2_8, %c5] : memref<3x16xf32, #tpu.memory_space<smem>>
      %c2_9 = arith.constant 2 : index
      %c6 = arith.constant 6 : index
      %18 = memref.load %arg1[%c2_9, %c6] : memref<3x16xf32, #tpu.memory_space<smem>>
      %c2_10 = arith.constant 2 : index
      %c7 = arith.constant 7 : index
      %19 = memref.load %arg1[%c2_10, %c7] : memref<3x16xf32, #tpu.memory_space<smem>>
      %c2_11 = arith.constant 2 : index
      %c8 = arith.constant 8 : index
      %20 = memref.load %arg1[%c2_11, %c8] : memref<3x16xf32, #tpu.memory_space<smem>>
      %c2_12 = arith.constant 2 : index
      %c9 = arith.constant 9 : index
      %21 = memref.load %arg1[%c2_12, %c9] : memref<3x16xf32, #tpu.memory_space<smem>>
      %c2_13 = arith.constant 2 : index
      %c10 = arith.constant 10 : index
      %22 = memref.load %arg1[%c2_13, %c10] : memref<3x16xf32, #tpu.memory_space<smem>>
      %c2_14 = arith.constant 2 : index
      %c11 = arith.constant 11 : index
      %23 = memref.load %arg1[%c2_14, %c11] : memref<3x16xf32, #tpu.memory_space<smem>>
      %c2_15 = arith.constant 2 : index
      %c12 = arith.constant 12 : index
      %24 = memref.load %arg1[%c2_15, %c12] : memref<3x16xf32, #tpu.memory_space<smem>>
      %c2_16 = arith.constant 2 : index
      %c13 = arith.constant 13 : index
      %25 = memref.load %arg1[%c2_16, %c13] : memref<3x16xf32, #tpu.memory_space<smem>>
      %c2_17 = arith.constant 2 : index
      %c14 = arith.constant 14 : index
      %26 = memref.load %arg1[%c2_17, %c14] : memref<3x16xf32, #tpu.memory_space<smem>>
      %c2_18 = arith.constant 2 : index
      %c15 = arith.constant 15 : index
      %27 = memref.load %arg1[%c2_18, %c15] : memref<3x16xf32, #tpu.memory_space<smem>>
      %c1_i32_19 = arith.constant 1 : i32
      %28 = vector.broadcast %c1_i32_19 : i32 to vector<8x128xi32>
      %29 = arith.andi %0, %28 : vector<8x128xi32>
      %c0_i32_20 = arith.constant 0 : i32
      %30 = vector.broadcast %c0_i32_20 : i32 to vector<8x128xi32>
      %31 = arith.cmpi ne, %29, %30 : vector<8x128xi32>
      %c1_i32_21 = arith.constant 1 : i32
      %32 = vector.broadcast %c1_i32_21 : i32 to vector<8x128xi32>
      %33 = arith.andi %1, %32 : vector<8x128xi32>
      %c0_i32_22 = arith.constant 0 : i32
      %34 = vector.broadcast %c0_i32_22 : i32 to vector<8x128xi32>
      %35 = arith.cmpi ne, %33, %34 : vector<8x128xi32>
      %36 = vector.broadcast %21 : f32 to vector<8x128xf32>
      %37 = vector.broadcast %20 : f32 to vector<8x128xf32>
      %38 = arith.select %35, %36, %37 : vector<8x128xi1>, vector<8x128xf32>
      %39 = vector.broadcast %13 : f32 to vector<8x128xf32>
      %40 = vector.broadcast %12 : f32 to vector<8x128xf32>
      %41 = arith.select %35, %39, %40 : vector<8x128xi1>, vector<8x128xf32>
      %42 = arith.select %31, %38, %41 : vector<8x128xi1>, vector<8x128xf32>
      %43 = vector.broadcast %23 : f32 to vector<8x128xf32>
      %44 = vector.broadcast %22 : f32 to vector<8x128xf32>
      %45 = arith.select %35, %43, %44 : vector<8x128xi1>, vector<8x128xf32>
      %46 = vector.broadcast %15 : f32 to vector<8x128xf32>
      %47 = vector.broadcast %14 : f32 to vector<8x128xf32>
      %48 = arith.select %35, %46, %47 : vector<8x128xi1>, vector<8x128xf32>
      %49 = arith.select %31, %45, %48 : vector<8x128xi1>, vector<8x128xf32>
      %50 = vector.broadcast %25 : f32 to vector<8x128xf32>
      %51 = vector.broadcast %24 : f32 to vector<8x128xf32>
      %52 = arith.select %35, %50, %51 : vector<8x128xi1>, vector<8x128xf32>
      %53 = vector.broadcast %17 : f32 to vector<8x128xf32>
      %54 = vector.broadcast %16 : f32 to vector<8x128xf32>
      %55 = arith.select %35, %53, %54 : vector<8x128xi1>, vector<8x128xf32>
      %56 = arith.select %31, %52, %55 : vector<8x128xi1>, vector<8x128xf32>
      %57 = vector.broadcast %27 : f32 to vector<8x128xf32>
      %58 = vector.broadcast %26 : f32 to vector<8x128xf32>
      %59 = arith.select %35, %57, %58 : vector<8x128xi1>, vector<8x128xf32>
      %60 = vector.broadcast %19 : f32 to vector<8x128xf32>
      %61 = vector.broadcast %18 : f32 to vector<8x128xf32>
      %62 = arith.select %35, %60, %61 : vector<8x128xi1>, vector<8x128xf32>
      %63 = arith.select %31, %59, %62 : vector<8x128xi1>, vector<8x128xf32>
      %c0_23 = arith.constant 0 : index
      %c0_24 = arith.constant 0 : index
      %c0_25 = arith.constant 0 : index
      %c0_26 = arith.constant 0 : index
      %64 = vector.load %arg2[%c0_23, %c0_24, %c0_25, %c0_26] : memref<1x24x8x128xf32, #tpu.memory_space<vmem>>, vector<1x1x8x128xf32>
      %65 = vector.shape_cast %64 : vector<1x1x8x128xf32> to vector<8x128xf32>
      %66 = vector.shape_cast %42 : vector<8x128xf32> to vector<1x1x8x128xf32>
      tpu.vector_store %arg2[%c0_23, %c0_24, %c0_25, %c0_26], %66 {strides = array<i32>} : memref<1x24x8x128xf32, #tpu.memory_space<vmem>>, vector<1x1x8x128xf32>,
      %c0_27 = arith.constant 0 : index
      %c1_28 = arith.constant 1 : index
      %c0_29 = arith.constant 0 : index
      %c0_30 = arith.constant 0 : index
      %67 = vector.load %arg2[%c0_27, %c1_28, %c0_29, %c0_30] : memref<1x24x8x128xf32, #tpu.memory_space<vmem>>, vector<1x1x8x128xf32>
      %68 = vector.shape_cast %67 : vector<1x1x8x128xf32> to vector<8x128xf32>
      %69 = vector.shape_cast %2 : vector<8x128xf32> to vector<1x1x8x128xf32>
      tpu.vector_store %arg2[%c0_27, %c1_28, %c0_29, %c0_30], %69 {strides = array<i32>} : memref<1x24x8x128xf32, #tpu.memory_space<vmem>>, vector<1x1x8x128xf32>,
      %c0_31 = arith.constant 0 : index
      %c2_32 = arith.constant 2 : index
      %c0_33 = arith.constant 0 : index
      %c0_34 = arith.constant 0 : index
      %70 = vector.load %arg2[%c0_31, %c2_32, %c0_33, %c0_34] : memref<1x24x8x128xf32, #tpu.memory_space<vmem>>, vector<1x1x8x128xf32>
      %71 = vector.shape_cast %70 : vector<1x1x8x128xf32> to vector<8x128xf32>
      %72 = vector.shape_cast %49 : vector<8x128xf32> to vector<1x1x8x128xf32>
      tpu.vector_store %arg2[%c0_31, %c2_32, %c0_33, %c0_34], %72 {strides = array<i32>} : memref<1x24x8x128xf32, #tpu.memory_space<vmem>>, vector<1x1x8x128xf32>,
      %c0_35 = arith.constant 0 : index
      %c3_36 = arith.constant 3 : index
      %c0_37 = arith.constant 0 : index
      %c0_38 = arith.constant 0 : index
      %73 = vector.load %arg2[%c0_35, %c3_36, %c0_37, %c0_38] : memref<1x24x8x128xf32, #tpu.memory_space<vmem>>, vector<1x1x8x128xf32>
      %74 = vector.shape_cast %73 : vector<1x1x8x128xf32> to vector<8x128xf32>
      %75 = vector.shape_cast %2 : vector<8x128xf32> to vector<1x1x8x128xf32>
      tpu.vector_store %arg2[%c0_35, %c3_36, %c0_37, %c0_38], %75 {strides = array<i32>} : memref<1x24x8x128xf32, #tpu.memory_space<vmem>>, vector<1x1x8x128xf32>,
      %c0_39 = arith.constant 0 : index
      %c4_40 = arith.constant 4 : index
      %c0_41 = arith.constant 0 : index
      %c0_42 = arith.constant 0 : index
      %76 = vector.load %arg2[%c0_39, %c4_40, %c0_41, %c0_42] : memref<1x24x8x128xf32, #tpu.memory_space<vmem>>, vector<1x1x8x128xf32>
      %77 = vector.shape_cast %76 : vector<1x1x8x128xf32> to vector<8x128xf32>
      %78 = vector.shape_cast %56 : vector<8x128xf32> to vector<1x1x8x128xf32>
      tpu.vector_store %arg2[%c0_39, %c4_40, %c0_41, %c0_42], %78 {strides = array<i32>} : memref<1x24x8x128xf32, #tpu.memory_space<vmem>>, vector<1x1x8x128xf32>,
      %c0_43 = arith.constant 0 : index
      %c5_44 = arith.constant 5 : index
      %c0_45 = arith.constant 0 : index
      %c0_46 = arith.constant 0 : index
      %79 = vector.load %arg2[%c0_43, %c5_44, %c0_45, %c0_46] : memref<1x24x8x128xf32, #tpu.memory_space<vmem>>, vector<1x1x8x128xf32>
      %80 = vector.shape_cast %79 : vector<1x1x8x128xf32> to vector<8x128xf32>
      %81 = vector.shape_cast %2 : vector<8x128xf32> to vector<1x1x8x128xf32>
      tpu.vector_store %arg2[%c0_43, %c5_44, %c0_45, %c0_46], %81 {strides = array<i32>} : memref<1x24x8x128xf32, #tpu.memory_space<vmem>>, vector<1x1x8x128xf32>,
      %c0_47 = arith.constant 0 : index
      %c6_48 = arith.constant 6 : index
      %c0_49 = arith.constant 0 : index
      %c0_50 = arith.constant 0 : index
      %82 = vector.load %arg2[%c0_47, %c6_48, %c0_49, %c0_50] : memref<1x24x8x128xf32, #tpu.memory_space<vmem>>, vector<1x1x8x128xf32>
      %83 = vector.shape_cast %82 : vector<1x1x8x128xf32> to vector<8x128xf32>
      %84 = vector.shape_cast %63 : vector<8x128xf32> to vector<1x1x8x128xf32>
      tpu.vector_store %arg2[%c0_47, %c6_48, %c0_49, %c0_50], %84 {strides = array<i32>} : memref<1x24x8x128xf32, #tpu.memory_space<vmem>>, vector<1x1x8x128xf32>,
      %c0_51 = arith.constant 0 : index
      %c7_52 = arith.constant 7 : index
      %c0_53 = arith.constant 0 : index
      %c0_54 = arith.constant 0 : index
      %85 = vector.load %arg2[%c0_51, %c7_52, %c0_53, %c0_54] : memref<1x24x8x128xf32, #tpu.memory_space<vmem>>, vector<1x1x8x128xf32>
      %86 = vector.shape_cast %85 : vector<1x1x8x128xf32> to vector<8x128xf32>
      %87 = vector.shape_cast %2 : vector<8x128xf32> to vector<1x1x8x128xf32>
      tpu.vector_store %arg2[%c0_51, %c7_52, %c0_53, %c0_54], %87 {strides = array<i32>} : memref<1x24x8x128xf32, #tpu.memory_space<vmem>>, vector<1x1x8x128xf32>,
      %c2_i32_55 = arith.constant 2 : i32
      %88 = vector.broadcast %c2_i32_55 : i32 to vector<8x128xi32>
      %89 = arith.andi %0, %88 : vector<8x128xi32>
      %c0_i32_56 = arith.constant 0 : i32
      %90 = vector.broadcast %c0_i32_56 : i32 to vector<8x128xi32>
      %91 = arith.cmpi ne, %89, %90 : vector<8x128xi32>
      %c2_i32_57 = arith.constant 2 : i32
      %92 = vector.broadcast %c2_i32_57 : i32 to vector<8x128xi32>
      %93 = arith.andi %1, %92 : vector<8x128xi32>
      %c0_i32_58 = arith.constant 0 : i32
      %94 = vector.broadcast %c0_i32_58 : i32 to vector<8x128xi32>
      %95 = arith.cmpi ne, %93, %94 : vector<8x128xi32>
      %96 = vector.broadcast %21 : f32 to vector<8x128xf32>
      %97 = vector.broadcast %20 : f32 to vector<8x128xf32>
      %98 = arith.select %95, %96, %97 : vector<8x128xi1>, vector<8x128xf32>
      %99 = vector.broadcast %13 : f32 to vector<8x128xf32>
      %100 = vector.broadcast %12 : f32 to vector<8x128xf32>
      %101 = arith.select %95, %99, %100 : vector<8x128xi1>, vector<8x128xf32>
      %102 = arith.select %91, %98, %101 : vector<8x128xi1>, vector<8x128xf32>
      %103 = vector.broadcast %23 : f32 to vector<8x128xf32>
      %104 = vector.broadcast %22 : f32 to vector<8x128xf32>
      %105 = arith.select %95, %103, %104 : vector<8x128xi1>, vector<8x128xf32>
      %106 = vector.broadcast %15 : f32 to vector<8x128xf32>
      %107 = vector.broadcast %14 : f32 to vector<8x128xf32>
      %108 = arith.select %95, %106, %107 : vector<8x128xi1>, vector<8x128xf32>
      %109 = arith.select %91, %105, %108 : vector<8x128xi1>, vector<8x128xf32>
      %110 = vector.broadcast %25 : f32 to vector<8x128xf32>
      %111 = vector.broadcast %24 : f32 to vector<8x128xf32>
      %112 = arith.select %95, %110, %111 : vector<8x128xi1>, vector<8x128xf32>
      %113 = vector.broadcast %17 : f32 to vector<8x128xf32>
      %114 = vector.broadcast %16 : f32 to vector<8x128xf32>
      %115 = arith.select %95, %113, %114 : vector<8x128xi1>, vector<8x128xf32>
      %116 = arith.select %91, %112, %115 : vector<8x128xi1>, vector<8x128xf32>
      %117 = vector.broadcast %27 : f32 to vector<8x128xf32>
      %118 = vector.broadcast %26 : f32 to vector<8x128xf32>
      %119 = arith.select %95, %117, %118 : vector<8x128xi1>, vector<8x128xf32>
      %120 = vector.broadcast %19 : f32 to vector<8x128xf32>
      %121 = vector.broadcast %18 : f32 to vector<8x128xf32>
      %122 = arith.select %95, %120, %121 : vector<8x128xi1>, vector<8x128xf32>
      %123 = arith.select %91, %119, %122 : vector<8x128xi1>, vector<8x128xf32>
      %124 = arith.mulf %42, %102 : vector<8x128xf32>
      %125 = arith.mulf %49, %116 : vector<8x128xf32>
      %126 = arith.addf %124, %125 : vector<8x128xf32>
      %127 = arith.mulf %42, %109 : vector<8x128xf32>
      %128 = arith.mulf %49, %123 : vector<8x128xf32>
      %129 = arith.addf %127, %128 : vector<8x128xf32>
      %130 = arith.mulf %56, %102 : vector<8x128xf32>
      %131 = arith.mulf %63, %116 : vector<8x128xf32>
      %132 = arith.addf %130, %131 : vector<8x128xf32>
      %133 = arith.mulf %56, %109 : vector<8x128xf32>
      %134 = arith.mulf %63, %123 : vector<8x128xf32>
      %135 = arith.addf %133, %134 : vector<8x128xf32>
      %c0_59 = arith.constant 0 : index
      %c8_60 = arith.constant 8 : index
      %c0_61 = arith.constant 0 : index
      %c0_62 = arith.constant 0 : index
      %136 = vector.load %arg2[%c0_59, %c8_60, %c0_61, %c0_62] : memref<1x24x8x128xf32, #tpu.memory_space<vmem>>, vector<1x1x8x128xf32>
      %137 = vector.shape_cast %136 : vector<1x1x8x128xf32> to vector<8x128xf32>
      %138 = vector.shape_cast %126 : vector<8x128xf32> to vector<1x1x8x128xf32>
      tpu.vector_store %arg2[%c0_59, %c8_60, %c0_61, %c0_62], %138 {strides = array<i32>} : memref<1x24x8x128xf32, #tpu.memory_space<vmem>>, vector<1x1x8x128xf32>,
      %c0_63 = arith.constant 0 : index
      %c9_64 = arith.constant 9 : index
      %c0_65 = arith.constant 0 : index
      %c0_66 = arith.constant 0 : index
      %139 = vector.load %arg2[%c0_63, %c9_64, %c0_65, %c0_66] : memref<1x24x8x128xf32, #tpu.memory_space<vmem>>, vector<1x1x8x128xf32>
      %140 = vector.shape_cast %139 : vector<1x1x8x128xf32> to vector<8x128xf32>
      %141 = vector.shape_cast %2 : vector<8x128xf32> to vector<1x1x8x128xf32>
      tpu.vector_store %arg2[%c0_63, %c9_64, %c0_65, %c0_66], %141 {strides = array<i32>} : memref<1x24x8x128xf32, #tpu.memory_space<vmem>>, vector<1x1x8x128xf32>,
      %c0_67 = arith.constant 0 : index
      %c10_68 = arith.constant 10 : index
      %c0_69 = arith.constant 0 : index
      %c0_70 = arith.constant 0 : index
      %142 = vector.load %arg2[%c0_67, %c10_68, %c0_69, %c0_70] : memref<1x24x8x128xf32, #tpu.memory_space<vmem>>, vector<1x1x8x128xf32>
      %143 = vector.shape_cast %142 : vector<1x1x8x128xf32> to vector<8x128xf32>
      %144 = vector.shape_cast %129 : vector<8x128xf32> to vector<1x1x8x128xf32>
      tpu.vector_store %arg2[%c0_67, %c10_68, %c0_69, %c0_70], %144 {strides = array<i32>} : memref<1x24x8x128xf32, #tpu.memory_space<vmem>>, vector<1x1x8x128xf32>,
      %c0_71 = arith.constant 0 : index
      %c11_72 = arith.constant 11 : index
      %c0_73 = arith.constant 0 : index
      %c0_74 = arith.constant 0 : index
      %145 = vector.load %arg2[%c0_71, %c11_72, %c0_73, %c0_74] : memref<1x24x8x128xf32, #tpu.memory_space<vmem>>, vector<1x1x8x128xf32>
      %146 = vector.shape_cast %145 : vector<1x1x8x128xf32> to vector<8x128xf32>
      %147 = vector.shape_cast %2 : vector<8x128xf32> to vector<1x1x8x128xf32>
      tpu.vector_store %arg2[%c0_71, %c11_72, %c0_73, %c0_74], %147 {strides = array<i32>} : memref<1x24x8x128xf32, #tpu.memory_space<vmem>>, vector<1x1x8x128xf32>,
      %c0_75 = arith.constant 0 : index
      %c12_76 = arith.constant 12 : index
      %c0_77 = arith.constant 0 : index
      %c0_78 = arith.constant 0 : index
      %148 = vector.load %arg2[%c0_75, %c12_76, %c0_77, %c0_78] : memref<1x24x8x128xf32, #tpu.memory_space<vmem>>, vector<1x1x8x128xf32>
      %149 = vector.shape_cast %148 : vector<1x1x8x128xf32> to vector<8x128xf32>
      %150 = vector.shape_cast %132 : vector<8x128xf32> to vector<1x1x8x128xf32>
      tpu.vector_store %arg2[%c0_75, %c12_76, %c0_77, %c0_78], %150 {strides = array<i32>} : memref<1x24x8x128xf32, #tpu.memory_space<vmem>>, vector<1x1x8x128xf32>,
      %c0_79 = arith.constant 0 : index
      %c13_80 = arith.constant 13 : index
      %c0_81 = arith.constant 0 : index
      %c0_82 = arith.constant 0 : index
      %151 = vector.load %arg2[%c0_79, %c13_80, %c0_81, %c0_82] : memref<1x24x8x128xf32, #tpu.memory_space<vmem>>, vector<1x1x8x128xf32>
      %152 = vector.shape_cast %151 : vector<1x1x8x128xf32> to vector<8x128xf32>
      %153 = vector.shape_cast %2 : vector<8x128xf32> to vector<1x1x8x128xf32>
      tpu.vector_store %arg2[%c0_79, %c13_80, %c0_81, %c0_82], %153 {strides = array<i32>} : memref<1x24x8x128xf32, #tpu.memory_space<vmem>>, vector<1x1x8x128xf32>,
      %c0_83 = arith.constant 0 : index
      %c14_84 = arith.constant 14 : index
      %c0_85 = arith.constant 0 : index
      %c0_86 = arith.constant 0 : index
      %154 = vector.load %arg2[%c0_83, %c14_84, %c0_85, %c0_86] : memref<1x24x8x128xf32, #tpu.memory_space<vmem>>, vector<1x1x8x128xf32>
      %155 = vector.shape_cast %154 : vector<1x1x8x128xf32> to vector<8x128xf32>
      %156 = vector.shape_cast %135 : vector<8x128xf32> to vector<1x1x8x128xf32>
      tpu.vector_store %arg2[%c0_83, %c14_84, %c0_85, %c0_86], %156 {strides = array<i32>} : memref<1x24x8x128xf32, #tpu.memory_space<vmem>>, vector<1x1x8x128xf32>,
      %c0_87 = arith.constant 0 : index
      %c15_88 = arith.constant 15 : index
      %c0_89 = arith.constant 0 : index
      %c0_90 = arith.constant 0 : index
      %157 = vector.load %arg2[%c0_87, %c15_88, %c0_89, %c0_90] : memref<1x24x8x128xf32, #tpu.memory_space<vmem>>, vector<1x1x8x128xf32>
      %158 = vector.shape_cast %157 : vector<1x1x8x128xf32> to vector<8x128xf32>
      %159 = vector.shape_cast %2 : vector<8x128xf32> to vector<1x1x8x128xf32>
      tpu.vector_store %arg2[%c0_87, %c15_88, %c0_89, %c0_90], %159 {strides = array<i32>} : memref<1x24x8x128xf32, #tpu.memory_space<vmem>>, vector<1x1x8x128xf32>,
      %c4_i32 = arith.constant 4 : i32
      %160 = vector.broadcast %c4_i32 : i32 to vector<8x128xi32>
      %161 = arith.andi %0, %160 : vector<8x128xi32>
      %c0_i32_91 = arith.constant 0 : i32
      %162 = vector.broadcast %c0_i32_91 : i32 to vector<8x128xi32>
      %163 = arith.cmpi ne, %161, %162 : vector<8x128xi32>
      %c4_i32_92 = arith.constant 4 : i32
      %164 = vector.broadcast %c4_i32_92 : i32 to vector<8x128xi32>
      %165 = arith.andi %1, %164 : vector<8x128xi32>
      %c0_i32_93 = arith.constant 0 : i32
      %166 = vector.broadcast %c0_i32_93 : i32 to vector<8x128xi32>
      %167 = arith.cmpi ne, %165, %166 : vector<8x128xi32>
      %168 = vector.broadcast %21 : f32 to vector<8x128xf32>
      %169 = vector.broadcast %20 : f32 to vector<8x128xf32>
      %170 = arith.select %167, %168, %169 : vector<8x128xi1>, vector<8x128xf32>
      %171 = vector.broadcast %13 : f32 to vector<8x128xf32>
      %172 = vector.broadcast %12 : f32 to vector<8x128xf32>
      %173 = arith.select %167, %171, %172 : vector<8x128xi1>, vector<8x128xf32>
      %174 = arith.select %163, %170, %173 : vector<8x128xi1>, vector<8x128xf32>
      %175 = vector.broadcast %23 : f32 to vector<8x128xf32>
      %176 = vector.broadcast %22 : f32 to vector<8x128xf32>
      %177 = arith.select %167, %175, %176 : vector<8x128xi1>, vector<8x128xf32>
      %178 = vector.broadcast %15 : f32 to vector<8x128xf32>
      %179 = vector.broadcast %14 : f32 to vector<8x128xf32>
      %180 = arith.select %167, %178, %179 : vector<8x128xi1>, vector<8x128xf32>
      %181 = arith.select %163, %177, %180 : vector<8x128xi1>, vector<8x128xf32>
      %182 = vector.broadcast %25 : f32 to vector<8x128xf32>
      %183 = vector.broadcast %24 : f32 to vector<8x128xf32>
      %184 = arith.select %167, %182, %183 : vector<8x128xi1>, vector<8x128xf32>
      %185 = vector.broadcast %17 : f32 to vector<8x128xf32>
      %186 = vector.broadcast %16 : f32 to vector<8x128xf32>
      %187 = arith.select %167, %185, %186 : vector<8x128xi1>, vector<8x128xf32>
      %188 = arith.select %163, %184, %187 : vector<8x128xi1>, vector<8x128xf32>
      %189 = vector.broadcast %27 : f32 to vector<8x128xf32>
      %190 = vector.broadcast %26 : f32 to vector<8x128xf32>
      %191 = arith.select %167, %189, %190 : vector<8x128xi1>, vector<8x128xf32>
      %192 = vector.broadcast %19 : f32 to vector<8x128xf32>
      %193 = vector.broadcast %18 : f32 to vector<8x128xf32>
      %194 = arith.select %167, %192, %193 : vector<8x128xi1>, vector<8x128xf32>
      %195 = arith.select %163, %191, %194 : vector<8x128xi1>, vector<8x128xf32>
      %196 = arith.mulf %126, %174 : vector<8x128xf32>
      %197 = arith.mulf %129, %188 : vector<8x128xf32>
      %198 = arith.addf %196, %197 : vector<8x128xf32>
      %199 = arith.mulf %126, %181 : vector<8x128xf32>
      %200 = arith.mulf %129, %195 : vector<8x128xf32>
      %201 = arith.addf %199, %200 : vector<8x128xf32>
      %202 = arith.mulf %132, %174 : vector<8x128xf32>
      %203 = arith.mulf %135, %188 : vector<8x128xf32>
      %204 = arith.addf %202, %203 : vector<8x128xf32>
      %205 = arith.mulf %132, %181 : vector<8x128xf32>
      %206 = arith.mulf %135, %195 : vector<8x128xf32>
      %207 = arith.addf %205, %206 : vector<8x128xf32>
      %c0_94 = arith.constant 0 : index
      %c16 = arith.constant 16 : index
      %c0_95 = arith.constant 0 : index
      %c0_96 = arith.constant 0 : index
      %208 = vector.load %arg2[%c0_94, %c16, %c0_95, %c0_96] : memref<1x24x8x128xf32, #tpu.memory_space<vmem>>, vector<1x1x8x128xf32>
      %209 = vector.shape_cast %208 : vector<1x1x8x128xf32> to vector<8x128xf32>
      %210 = vector.shape_cast %198 : vector<8x128xf32> to vector<1x1x8x128xf32>
      tpu.vector_store %arg2[%c0_94, %c16, %c0_95, %c0_96], %210 {strides = array<i32>} : memref<1x24x8x128xf32, #tpu.memory_space<vmem>>, vector<1x1x8x128xf32>,
      %c0_97 = arith.constant 0 : index
      %c17 = arith.constant 17 : index
      %c0_98 = arith.constant 0 : index
      %c0_99 = arith.constant 0 : index
      %211 = vector.load %arg2[%c0_97, %c17, %c0_98, %c0_99] : memref<1x24x8x128xf32, #tpu.memory_space<vmem>>, vector<1x1x8x128xf32>
      %212 = vector.shape_cast %211 : vector<1x1x8x128xf32> to vector<8x128xf32>
      %213 = vector.shape_cast %2 : vector<8x128xf32> to vector<1x1x8x128xf32>
      tpu.vector_store %arg2[%c0_97, %c17, %c0_98, %c0_99], %213 {strides = array<i32>} : memref<1x24x8x128xf32, #tpu.memory_space<vmem>>, vector<1x1x8x128xf32>,
      %c0_100 = arith.constant 0 : index
      %c18 = arith.constant 18 : index
      %c0_101 = arith.constant 0 : index
      %c0_102 = arith.constant 0 : index
      %214 = vector.load %arg2[%c0_100, %c18, %c0_101, %c0_102] : memref<1x24x8x128xf32, #tpu.memory_space<vmem>>, vector<1x1x8x128xf32>
      %215 = vector.shape_cast %214 : vector<1x1x8x128xf32> to vector<8x128xf32>
      %216 = vector.shape_cast %201 : vector<8x128xf32> to vector<1x1x8x128xf32>
      tpu.vector_store %arg2[%c0_100, %c18, %c0_101, %c0_102], %216 {strides = array<i32>} : memref<1x24x8x128xf32, #tpu.memory_space<vmem>>, vector<1x1x8x128xf32>,
      %c0_103 = arith.constant 0 : index
      %c19 = arith.constant 19 : index
      %c0_104 = arith.constant 0 : index
      %c0_105 = arith.constant 0 : index
      %217 = vector.load %arg2[%c0_103, %c19, %c0_104, %c0_105] : memref<1x24x8x128xf32, #tpu.memory_space<vmem>>, vector<1x1x8x128xf32>
      %218 = vector.shape_cast %217 : vector<1x1x8x128xf32> to vector<8x128xf32>
      %219 = vector.shape_cast %2 : vector<8x128xf32> to vector<1x1x8x128xf32>
      tpu.vector_store %arg2[%c0_103, %c19, %c0_104, %c0_105], %219 {strides = array<i32>} : memref<1x24x8x128xf32, #tpu.memory_space<vmem>>, vector<1x1x8x128xf32>,
      %c0_106 = arith.constant 0 : index
      %c20 = arith.constant 20 : index
      %c0_107 = arith.constant 0 : index
      %c0_108 = arith.constant 0 : index
      %220 = vector.load %arg2[%c0_106, %c20, %c0_107, %c0_108] : memref<1x24x8x128xf32, #tpu.memory_space<vmem>>, vector<1x1x8x128xf32>
      %221 = vector.shape_cast %220 : vector<1x1x8x128xf32> to vector<8x128xf32>
      %222 = vector.shape_cast %204 : vector<8x128xf32> to vector<1x1x8x128xf32>
      tpu.vector_store %arg2[%c0_106, %c20, %c0_107, %c0_108], %222 {strides = array<i32>} : memref<1x24x8x128xf32, #tpu.memory_space<vmem>>, vector<1x1x8x128xf32>,
      %c0_109 = arith.constant 0 : index
      %c21 = arith.constant 21 : index
      %c0_110 = arith.constant 0 : index
      %c0_111 = arith.constant 0 : index
      %223 = vector.load %arg2[%c0_109, %c21, %c0_110, %c0_111] : memref<1x24x8x128xf32, #tpu.memory_space<vmem>>, vector<1x1x8x128xf32>
      %224 = vector.shape_cast %223 : vector<1x1x8x128xf32> to vector<8x128xf32>
      %225 = vector.shape_cast %2 : vector<8x128xf32> to vector<1x1x8x128xf32>
      tpu.vector_store %arg2[%c0_109, %c21, %c0_110, %c0_111], %225 {strides = array<i32>} : memref<1x24x8x128xf32, #tpu.memory_space<vmem>>, vector<1x1x8x128xf32>,
      %c0_112 = arith.constant 0 : index
      %c22 = arith.constant 22 : index
      %c0_113 = arith.constant 0 : index
      %c0_114 = arith.constant 0 : index
      %226 = vector.load %arg2[%c0_112, %c22, %c0_113, %c0_114] : memref<1x24x8x128xf32, #tpu.memory_space<vmem>>, vector<1x1x8x128xf32>
      %227 = vector.shape_cast %226 : vector<1x1x8x128xf32> to vector<8x128xf32>
      %228 = vector.shape_cast %207 : vector<8x128xf32> to vector<1x1x8x128xf32>
      tpu.vector_store %arg2[%c0_112, %c22, %c0_113, %c0_114], %228 {strides = array<i32>} : memref<1x24x8x128xf32, #tpu.memory_space<vmem>>, vector<1x1x8x128xf32>,
      %c0_115 = arith.constant 0 : index
      %c23 = arith.constant 23 : index
      %c0_116 = arith.constant 0 : index
      %c0_117 = arith.constant 0 : index
      %229 = vector.load %arg2[%c0_115, %c23, %c0_116, %c0_117] : memref<1x24x8x128xf32, #tpu.memory_space<vmem>>, vector<1x1x8x128xf32>
      %230 = vector.shape_cast %229 : vector<1x1x8x128xf32> to vector<8x128xf32>
      %231 = vector.shape_cast %2 : vector<8x128xf32> to vector<1x1x8x128xf32>
      tpu.vector_store %arg2[%c0_115, %c23, %c0_116, %c0_117], %231 {strides = array<i32>} : memref<1x24x8x128xf32, #tpu.memory_space<vmem>>, vector<1x1x8x128xf32>,
    } else {
    }
    return
  }
  func.func @transform_0(%arg0: i32) -> (i32, i32) {
    %c0_i32 = arith.constant 0 : i32
    %c0_i32_0 = arith.constant 0 : i32
    %c0_i32_1 = arith.constant 0 : i32
    return %c0_i32, %c0_i32_0 : i32, i32
  }
  func.func @transform_1(%arg0: i32) -> (i32, i32, i32, i32) {
    %c0_i32 = arith.constant 0 : i32
    %c0_i32_0 = arith.constant 0 : i32
    %c0_i32_1 = arith.constant 0 : i32
    %c0_i32_2 = arith.constant 0 : i32
    return %arg0, %c0_i32, %c0_i32_0, %c0_i32_1 : i32, i32, i32, i32
  }
}

</mosaic_0001>

<bundles_post_ra>
// kernel: tpu_custom_call.1
= control target key start
LH: loop header
LB: loop body
LE: loop exit
PB: predicated region body
PF: predicated region fallthrough
CT: control target
= control target key end

     0   :  { %6 = vsyncpa [#allocation4], 0  ;;  %s1218_s0 = inlined_call_operand.hbm [shape: f32[3,16], index: 0, kind: input, shape index: {}]   ;;  %s1219_s1 = inlined_call_operand.hbm [shape: f32[3,24,8,128], index: 1, kind: output, shape index: {}]  }
   0x1   :  { %7 = vsyncpa [#allocation3], 0 }
   0x2   :  { %9 = vsyncpa [#allocation3 + $0x1], 0  ;;  %s851_s6 = smov 0   ;;  %s853_s7 = smov 0  }
   0x3   :  { %s855_s8 = smov 0   ;;  %s857_s9 = smov 0  }
   0x4 LB: > { %s872_s10 = sadd.s32 4294967295, %s833_s9   ;;  %s584_s11 = sadd.s32 4294967294, %s833_s9   ;;  %s833_s9 = sphi %s857_s9, %s1249_s9   ;;  %s829_s8 = sphi %s855_s8, %s1248_s8   ;;  %s825_s7 = sphi %s853_s7, %s1247_s7   ;;  %s821_s6 = sphi %s851_s6, %s1246_s6  }
   0x5   : > { %s876_s12 = sadd.s32 1, %s833_s9   ;;  %s43_s13 = sadd.s32 1, %s829_s8 }
   0x6   : > { %s40_s14 = ssub.s32 %s833_s9, %s876_s12  ;;  %p53_p0 = scmp.ne.s32.totalorder %s829_s8, %s825_s7 }
   0x7   : > { %p41_p1 = scmp.eq.s32.totalorder %s40_s14, 0  ;;  %p54_p2 = scmp.eq.s32.totalorder %s872_s10, 2 }
   0x8   : > { %p59_p3 = scmp.ne.s32.totalorder %s825_s7, %s821_s6  ;;  %p60_p4 = scmp.eq.s32.totalorder %s584_s11, 2 }
   0x9   : > { %s887_s15 = scalar_select %p41_p1, %s829_s8, %s43_s13  }
   0xa   : > { %p889_p5 = por %p54_p2, %p53_p0  ;;  %p893_p6 = por %p60_p4, %p59_p3 }
   0xb   : > { %p585_p7 = scmp.ge.s32.totalorder %s833_s9, 1  ;;  %p67_p8 = scmp.lt.s32.totalorder %s833_s9, 4 }
   0xc   : > { %p586_p9 = scmp.ne.s32.totalorder %s872_s10, 0  ;;  %p711_p10 = scmp.eq.s32.totalorder %s872_s10, 0 }
   0xd   : > { %p68_p11 = pnand %p585_p7, %p67_p8  ;;  %s79_s20 = sshll.u32 %s1218_s0, 4  ;;  %s80_s20 = int_to_ptr.hbm [resolvable:$true] %s79_s20 }
   0xe   : > { %s835_s21 = smov [#allocation2]  }
   0xf   : > { %p703_p12 = pneg %p68_p11  ;;  %92 = sbr.rel (%p68_p11) target bundleno = 139 (0x8b), region = 24 }
  0x11   : > { %p704_p13 = pnand %p711_p10, %p703_p12 }
  0x13   : > { %706 = dma.hbm_to_smem (!%p704_p13), %s80_s20, 64, %s835_s21, [#allocation4]  }
  0x14   : > { %812 = dma.done.wait (%p711_p10), [#allocation4], 64  }
  0x15   : > { %814 = vsyncadd (%p711_p10), [#allocation4], 4294967232 }
  0x16   : > { %99 = sfence }
  0x17   : > { %s106_s22 = sand.u32 1, %s825_s7   ;;  %v109_v0 = vlaneseq  ;;  %116 = sbr.rel (%p586_p9) target bundleno = 53 (0x35), region = 32 }
  0x18   : > { %s695_s23 = smul.u32 192, %s106_s22  ;;  %s117_s25 = sld [smem:[#allocation2]] (!%p586_p9) }
  0x19   : > { %v907_v1 = vshrl.u32 %v109_v0, 7  ;;  %v909_v2 = vand.u32 127, %v109_v0  ;;  %s590_s26 = sld [smem:[#allocation2 + $0x1]] (!%p586_p9) }
  0x1a   : > { %s911_s24 = scalar_lea.vmem [#allocation5], %s695_s23  ;;  %s591_s27 = sld [smem:[#allocation2 + $0x2]] (!%p586_p9) }
  0x1b   : > { %s592_s28 = sld [smem:[#allocation2 + $0x3]] (!%p586_p9) }
  0x1c   : > { %v836_v3 = vmov 0.0   ;;  %v125_v4 = vand.u32 1, %v909_v2  ;;  %v158_v5 = vand.u32 2, %v909_v2  ;;  %s593_s29 = sld [smem:[#allocation2 + $0x4]]  ;;  %v196_v6 = vand.u32 4, %v909_v2 }
  0x1d   : > { %140 = vst [vmem:[%s911_s24] sm:$0xff] %v836_v3  ;;  %s594_s30 = sld [smem:[#allocation2 + $0x5]] }
  0x1e   : > { %598 = vst [vmem:[%s911_s24 + $0x10] sm:$0xff] %v836_v3  ;;  %vm923_vm0 = vcmp.ne.s32.totalorder %v125_v4, 0  ;;  %vm927_vm1 = vcmp.ne.s32.totalorder %v158_v5, 0  ;;  %v128_v9 = vstv %s117_s25  ;;  %s595_s2 = sld [smem:[#allocation2 + $0x6]]  ;;  %vm938_vm2 = vcmp.ne.s32.totalorder %v196_v6, 0 }
  0x1f   : > { %600 = vst [vmem:[%s911_s24 + $0x20] sm:$0xff] %v836_v3  ;;  %v127_v10 = vstv %s590_s26  ;;  %s596_s3 = sld [smem:[#allocation2 + $0x7]] }
  0x20   : > { %602 = vst [vmem:[%s911_s24 + $0x30] sm:$0xff] %v836_v3  ;;  %v129_v11 = vsel %vm923_vm0, %v127_v10, %v128_v9  ;;  %v131_v12 = vstv %s591_s27  ;;  %v160_v13 = vsel %vm927_vm1, %v127_v10, %v128_v9  ;;  %v198_v23 = vsel %vm938_vm2, %v127_v10, %v128_v9 }
  0x21   : > { %605 = vst [vmem:[%s911_s24 + $0x48] sm:$0xff] %v836_v3  ;;  %v130_v15 = vstv %s592_s28  ;;  %v139_v16 = vmul.f32 -0.01, %v129_v11  ;;  %v164_v20 = vmul.f32 %v160_v13, %v129_v11 }
  0x22   : > { %607 = vst [vmem:[%s911_s24 + $0x58] sm:$0xff] %v836_v3  ;;  %v161_v17 = vsel %vm927_vm1, %v130_v15, %v131_v12  ;;  %v132_v18 = vsel %vm923_vm0, %v130_v15, %v131_v12  ;;  %v134_v19 = vstv %s593_s29  ;;  %v199_v35 = vsel %vm938_vm2, %v130_v15, %v131_v12 }
  0x23   : > { %609 = vst [vmem:[%s911_s24 + $0x68] sm:$0xff] %v836_v3  ;;  %v133_v21 = vstv %s594_s30  ;;  %v143_v22 = vmul.f32 -0.01, %v132_v18  ;;  %v167_v24 = vmul.f32 %v161_v17, %v129_v11 }
  0x24   : > { %611 = vst [vmem:[%s911_s24 + $0x78] sm:$0xff] %v836_v3  ;;  %v137_v25 = vstv %s595_s2  ;;  %v162_v26 = vsel %vm927_vm1, %v133_v21, %v134_v19  ;;  %v135_v27 = vsel %vm923_vm0, %v133_v21, %v134_v19  ;;  %v200_v41 = vsel %vm938_vm2, %v133_v21, %v134_v19 }
  0x25   : > { %612 = vst [vmem:[%s911_s24 + $0x80] sm:$0xff] %v836_v3  ;;  %v136_v28 = vstv %s596_s3  ;;  %v165_v29 = vmul.f32 %v162_v26, %v132_v18  ;;  %v148_v30 = vmul.f32 -0.01, %v135_v27  ;;  %v170_v31 = vmul.f32 %v160_v13, %v135_v27 }
  0x26   : > { %614 = vst [vmem:[%s911_s24 + $0x90] sm:$0xff] %v836_v3  ;;  %v163_v32 = vsel %vm927_vm1, %v136_v28, %v137_v25  ;;  %v173_v33 = vmul.f32 %v161_v17, %v135_v27  ;;  %v138_v34 = vsel %vm923_vm0, %v136_v28, %v137_v25  ;;  %v201_v45 = vsel %vm938_vm2, %v136_v28, %v137_v25 }
  0x27   : > { %616 = vst [vmem:[%s911_s24 + $0xa0] sm:$0xff] %v836_v3  ;;  %v168_v36 = vmul.f32 %v163_v32, %v132_v18  ;;  %v153_v37 = vmul.f32 -0.01, %v138_v34  ;;  %v171_v38 = vmul.f32 %v162_v26, %v138_v34  ;;  %v174_v39 = vmul.f32 %v163_v32, %v138_v34 }
  0x28   : > { %618 = vst [vmem:[%s911_s24 + $0xb0] sm:$0xff] %v836_v3  ;;  %v166_v40 = vadd.f32 %v165_v29, %v164_v20 }
  0x29   : > { %597 = vst [vmem:[%s911_s24 + $0x8] sm:$0xff] %v139_v16  ;;  %v169_v42 = vadd.f32 %v168_v36, %v167_v24  ;;  %v172_v43 = vadd.f32 %v171_v38, %v170_v31  ;;  %v175_v44 = vadd.f32 %v174_v39, %v173_v33 }
  0x2a   : > { %599 = vst [vmem:[%s911_s24 + $0x18] sm:$0xff] %v143_v22  ;;  %v176_v46 = vmul.f32 -5e-05, %v166_v40  ;;  %v202_v47 = vmul.f32 %v198_v23, %v166_v40  ;;  %v205_v48 = vmul.f32 %v199_v35, %v166_v40 }
  0x2b   : > { %601 = vst [vmem:[%s911_s24 + $0x28] sm:$0xff] %v148_v30  ;;  %v181_v49 = vmul.f32 -5e-05, %v169_v42  ;;  %v186_v50 = vmul.f32 -5e-05, %v172_v43  ;;  %v203_v52 = vmul.f32 %v200_v41, %v169_v42  ;;  %v206_v53 = vmul.f32 %v201_v45, %v169_v42 }
  0x2c   : > { %603 = vst [vmem:[%s911_s24 + $0x38] sm:$0xff] %v153_v37  ;;  %v191_v51 = vmul.f32 -5e-05, %v175_v44  ;;  %v208_v54 = vmul.f32 %v198_v23, %v172_v43  ;;  %v209_v55 = vmul.f32 %v200_v41, %v175_v44  ;;  %v211_v56 = vmul.f32 %v199_v35, %v172_v43 }
  0x2d   : > { %604 = vst [vmem:[%s911_s24 + $0x40] sm:$0xff] %v176_v46  ;;  %v204_v57 = vadd.f32 %v203_v52, %v202_v47  ;;  %v212_v58 = vmul.f32 %v201_v45, %v175_v44  ;;  %v207_v59 = vadd.f32 %v206_v53, %v205_v48 }
  0x2e   : > { %606 = vst [vmem:[%s911_s24 + $0x50] sm:$0xff] %v181_v49  ;;  %v210_v60 = vadd.f32 %v209_v55, %v208_v54 }
  0x2f   : > { %608 = vst [vmem:[%s911_s24 + $0x60] sm:$0xff] %v186_v50  ;;  %v214_v61 = vmul.f32 1.6666667e-07, %v204_v57  ;;  %v213_v62 = vadd.f32 %v212_v58, %v211_v56  ;;  %v219_v63 = vmul.f32 1.6666667e-07, %v207_v59 }
  0x30   : > { %610 = vst [vmem:[%s911_s24 + $0x70] sm:$0xff] %v191_v51  ;;  %v224_v0 = vmul.f32 1.6666667e-07, %v210_v60 }
  0x31   : > { %613 = vst [vmem:[%s911_s24 + $0x88] sm:$0xff] %v214_v61  ;;  %v229_v3 = vmul.f32 1.6666667e-07, %v213_v62 }
  0x32   : > { %615 = vst [vmem:[%s911_s24 + $0x98] sm:$0xff] %v219_v63 }
  0x33   : > { %617 = vst [vmem:[%s911_s24 + $0xa8] sm:$0xff] %v224_v0 }
  0x34   : > { %619 = vst [vmem:[%s911_s24 + $0xb8] sm:$0xff] %v229_v3 }
  0x35 PF: > { %p620_p0 = scmp.ne.s32.totalorder %s872_s10, 1 }
  0x36   : > { %s621_s4 = sld [smem:[#allocation2 + $0x80]] (!%p620_p0) }
  0x37   : > { %237 = sbr.rel (%p620_p0) target bundleno = 85 (0x55), region = 36  ;;  %s622_s5 = sld [smem:[#allocation2 + $0x82]] (!%p620_p0) }
  0x38   : > { %s625_s11 = sld [smem:[#allocation2 + $0x88]] (!%p620_p0) }
  0x39   : > { %s626_s13 = sld [smem:[#allocation2 + $0x8a]] (!%p620_p0) }
  0x3a   : > { %s623_s14 = sld [smem:[#allocation2 + $0x84]] (!%p620_p0) }
  0x3b   : > { %s624_s18 = sld [smem:[#allocation2 + $0x86]] (!%p620_p0) }
  0x3c   : > { %v837_v4 = vmov 0.0   ;;  %v246_v5 = vand.u32 1, %v907_v1  ;;  %v283_v6 = vand.u32 2, %v907_v1  ;;  %v317_v7 = vand.u32 4, %v907_v1  ;;  %s627_s19 = sld [smem:[#allocation2 + $0x8c]] }
  0x3d   : > { %629 = vst [vmem:[%s911_s24 + $0x8] sm:$0xff] %v837_v4  ;;  %v250_v9 = vstv %s621_s4  ;;  %v255_v11 = vstv %s622_s5  ;;  %s628_s20 = sld [smem:[#allocation2 + $0x8e]] }
  0x3e   : > { %631 = vst [vmem:[%s911_s24 + $0x18] sm:$0xff] %v837_v4  ;;  %vm987_vm3 = vcmp.ne.s32.totalorder %v246_v5, 0  ;;  %vm991_vm4 = vcmp.ne.s32.totalorder %v283_v6, 0  ;;  %v248_v12 = vstv %s625_s11  ;;  %vm1003_vm5 = vcmp.ne.s32.totalorder %v317_v7, 0 }
  0x3f   : > { %633 = vst [vmem:[%s911_s24 + $0x28] sm:$0xff] %v837_v4  ;;  %v252_v13 = vsel %vm987_vm3, %v248_v12, %v250_v9  ;;  %v253_v14 = vstv %s626_s13  ;;  %v285_v15 = vsel %vm991_vm4, %v248_v12, %v250_v9  ;;  %v319_v23 = vsel %vm1003_vm5, %v248_v12, %v250_v9 }
  0x40   : > { %635 = vst [vmem:[%s911_s24 + $0x38] sm:$0xff] %v837_v4  ;;  %v286_v17 = vsel %vm991_vm4, %v253_v14, %v255_v11  ;;  %v260_v18 = vstv %s623_s14  ;;  %v257_v19 = vsel %vm987_vm3, %v253_v14, %v255_v11  ;;  %v289_v21 = vmul.f32 %v285_v15, %v252_v13 }
  0x41   : > { %637 = vst [vmem:[%s911_s24 + $0x48] sm:$0xff] %v837_v4  ;;  %v265_v20 = vstv %s624_s18  ;;  %v292_v24 = vmul.f32 %v286_v17, %v252_v13  ;;  %v320_v35 = vsel %vm1003_vm5, %v253_v14, %v255_v11 }
  0x42   : > { %639 = vst [vmem:[%s911_s24 + $0x58] sm:$0xff] %v837_v4  ;;  %v258_v22 = vstv %s627_s19 }
  0x43   : > { %641 = vst [vmem:[%s911_s24 + $0x68] sm:$0xff] %v837_v4  ;;  %v263_v25 = vstv %s628_s20  ;;  %v287_v26 = vsel %vm991_vm4, %v258_v22, %v260_v18  ;;  %v262_v27 = vsel %vm987_vm3, %v258_v22, %v260_v18  ;;  %v321_v34 = vsel %vm1003_vm5, %v258_v22, %v260_v18 }
  0x44   : > { %643 = vst [vmem:[%s911_s24 + $0x78] sm:$0xff] %v837_v4  ;;  %v288_v28 = vsel %vm991_vm4, %v263_v25, %v265_v20  ;;  %v290_v29 = vmul.f32 %v287_v26, %v257_v19  ;;  %v295_v30 = vmul.f32 %v285_v15, %v262_v27  ;;  %v298_v31 = vmul.f32 %v286_v17, %v262_v27 }
  0x45   : > { %645 = vst [vmem:[%s911_s24 + $0x88] sm:$0xff] %v837_v4  ;;  %v293_v32 = vmul.f32 %v288_v28, %v257_v19  ;;  %v267_v33 = vsel %vm987_vm3, %v263_v25, %v265_v20  ;;  %v322_v39 = vsel %vm1003_vm5, %v263_v25, %v265_v20 }
  0x46   : > { %268 = vst [vmem:[%s911_s24] sm:$0xff] %v252_v13  ;;  %v296_v36 = vmul.f32 %v287_v26, %v267_v33  ;;  %v299_v37 = vmul.f32 %v288_v28, %v267_v33  ;;  %v291_v38 = vadd.f32 %v290_v29, %v289_v21 }
  0x47   : > { %647 = vst [vmem:[%s911_s24 + $0x98] sm:$0xff] %v837_v4  ;;  %v294_v40 = vadd.f32 %v293_v32, %v292_v24 }
  0x48   : > { %649 = vst [vmem:[%s911_s24 + $0xa8] sm:$0xff] %v837_v4  ;;  %v297_v41 = vadd.f32 %v296_v36, %v295_v30  ;;  %v300_v42 = vadd.f32 %v299_v37, %v298_v31  ;;  %v323_v43 = vmul.f32 %v319_v23, %v291_v38  ;;  %v326_v44 = vmul.f32 %v320_v35, %v291_v38 }
  0x49   : > { %651 = vst [vmem:[%s911_s24 + $0xb8] sm:$0xff] %v837_v4  ;;  %v324_v45 = vmul.f32 %v321_v34, %v294_v40  ;;  %v327_v46 = vmul.f32 %v322_v39, %v294_v40 }
  0x4a   : > { %630 = vst [vmem:[%s911_s24 + $0x10] sm:$0xff] %v257_v19  ;;  %v329_v47 = vmul.f32 %v319_v23, %v297_v41  ;;  %v330_v48 = vmul.f32 %v321_v34, %v300_v42  ;;  %v332_v49 = vmul.f32 %v320_v35, %v297_v41  ;;  %v333_v50 = vmul.f32 %v322_v39, %v300_v42 }
  0x4b   : > { %632 = vst [vmem:[%s911_s24 + $0x20] sm:$0xff] %v262_v27  ;;  %v325_v51 = vadd.f32 %v324_v45, %v323_v43  ;;  %v328_v52 = vadd.f32 %v327_v46, %v326_v44 }
  0x4c   : > { %634 = vst [vmem:[%s911_s24 + $0x30] sm:$0xff] %v267_v33  ;;  %v331_v53 = vadd.f32 %v330_v48, %v329_v47  ;;  %v334_v54 = vadd.f32 %v333_v50, %v332_v49 }
  0x4d   : > { %636 = vst [vmem:[%s911_s24 + $0x40] sm:$0xff] %v291_v38 }
  0x4e   : > { %638 = vst [vmem:[%s911_s24 + $0x50] sm:$0xff] %v294_v40 }
  0x4f   : > { %640 = vst [vmem:[%s911_s24 + $0x60] sm:$0xff] %v297_v41 }
  0x50   : > { %642 = vst [vmem:[%s911_s24 + $0x70] sm:$0xff] %v300_v42 }
  0x51   : > { %644 = vst [vmem:[%s911_s24 + $0x80] sm:$0xff] %v325_v51 }
  0x52   : > { %646 = vst [vmem:[%s911_s24 + $0x90] sm:$0xff] %v328_v52 }
  0x53   : > { %648 = vst [vmem:[%s911_s24 + $0xa0] sm:$0xff] %v331_v53 }
  0x54   : > { %650 = vst [vmem:[%s911_s24 + $0xb0] sm:$0xff] %v334_v54 }
  0x55 PF: > { %p652_p1 = scmp.ne.s32.totalorder %s872_s10, 2 }
  0x56   : > { %s653_s21 = sld [smem:[#allocation2 + $0x100]] (!%p652_p1) }
  0x57   : > { %354 = sbr.rel (%p652_p1) target bundleno = 122 (0x7a), region = 40  ;;  %s654_s23 = sld [smem:[#allocation2 + $0x101]] (!%p652_p1) }
  0x58   : > { %s655_s25 = sld [smem:[#allocation2 + $0x102]] (!%p652_p1) }
  0x59   : > { %s656_s26 = sld [smem:[#allocation2 + $0x103]] (!%p652_p1) }
  0x5a   : > { %s661_s27 = sld [smem:[#allocation2 + $0x108]] (!%p652_p1) }
  0x5b   : > { %s662_s28 = sld [smem:[#allocation2 + $0x109]] (!%p652_p1) }
  0x5c   : > { %v373_v55 = vand.u32 1, %v909_v2  ;;  %v838_v56 = vmov 0.0   ;;  %v420_v57 = vand.u32 2, %v909_v2  ;;  %s1048_s29 = sld [smem:[#allocation2 + $0x10a]]  ;;  %v371_v58 = vand.u32 1, %v907_v1 }
  0x5d   : > { %669 = vst [vmem:[%s911_s24 + $0x8] sm:$0xff] %v838_v56  ;;  %v464_v59 = vand.u32 4, %v909_v2  ;;  %s1053_s30 = sld [smem:[#allocation2 + $0x10b]]  ;;  %v378_v61 = vstv %s654_s23  ;;  %v379_v62 = vstv %s653_s21  ;;  %v418_v63 = vand.u32 2, %v907_v1 }
  0x5e   : > { %671 = vst [vmem:[%s911_s24 + $0x18] sm:$0xff] %v838_v56  ;;  %vm1055_vm6 = vcmp.ne.s32.totalorder %v373_v55, 0  ;;  %v386_v0 = vstv %s655_s25  ;;  %vm1061_vm7 = vcmp.ne.s32.totalorder %v420_v57, 0  ;;  %s1066_s2 = sld [smem:[#allocation2 + $0x104]]  ;;  %v462_v4 = vand.u32 4, %v907_v1 }
  0x5f   : > { %673 = vst [vmem:[%s911_s24 + $0x28] sm:$0xff] %v838_v56  ;;  %v385_v2 = vstv %s656_s26  ;;  %s1069_s3 = sld [smem:[#allocation2 + $0x105]]  ;;  %vm1072_vm8 = vcmp.ne.s32.totalorder %v371_v58, 0  ;;  %v380_v7 = vsel %vm1055_vm6, %v378_v61, %v379_v62  ;;  %vm1081_vm9 = vcmp.ne.s32.totalorder %v464_v59, 0 }
  0x60   : > { %675 = vst [vmem:[%s911_s24 + $0x38] sm:$0xff] %v838_v56  ;;  %v376_v6 = vstv %s661_s27  ;;  %s1079_s4 = sld [smem:[#allocation2 + $0x106]]  ;;  %vm1085_vm10 = vcmp.ne.s32.totalorder %v418_v63, 0  ;;  %v423_v10 = vsel %vm1061_vm7, %v378_v61, %v379_v62  ;;  %v426_v11 = vsel %vm1061_vm7, %v385_v2, %v386_v0 }
  0x61   : > { %677 = vst [vmem:[%s911_s24 + $0x48] sm:$0xff] %v838_v56  ;;  %v375_v9 = vstv %s662_s28  ;;  %s660_s5 = sld [smem:[#allocation2 + $0x107]]  ;;  %v387_v15 = vsel %vm1055_vm6, %v385_v2, %v386_v0  ;;  %vm1106_vm11 = vcmp.ne.s32.totalorder %v462_v4, 0  ;;  %v467_v19 = vsel %vm1081_vm9, %v378_v61, %v379_v62 }
  0x62   : > { %679 = vst [vmem:[%s911_s24 + $0x58] sm:$0xff] %v838_v56  ;;  %v377_v12 = vsel %vm1055_vm6, %v375_v9, %v376_v6  ;;  %v383_v13 = vstv %s1048_s29  ;;  %v422_v14 = vsel %vm1061_vm7, %v375_v9, %v376_v6  ;;  %s665_s11 = sld [smem:[#allocation2 + $0x10c]]  ;;  %v466_v23 = vsel %vm1081_vm9, %v375_v9, %v376_v6 }
  0x63   : > { %681 = vst [vmem:[%s911_s24 + $0x68] sm:$0xff] %v838_v56  ;;  %v381_v16 = vsel %vm1072_vm8, %v377_v12, %v380_v7  ;;  %v382_v17 = vstv %s1053_s30  ;;  %s666_s13 = sld [smem:[#allocation2 + $0x10d]]  ;;  %v424_v20 = vsel %vm1085_vm10, %v422_v14, %v423_v10  ;;  %v470_v30 = vsel %vm1081_vm9, %v385_v2, %v386_v0 }
  0x64   : > { %683 = vst [vmem:[%s911_s24 + $0x78] sm:$0xff] %v838_v56  ;;  %v425_v21 = vsel %vm1061_vm7, %v382_v17, %v383_v13  ;;  %s667_s14 = sld [smem:[#allocation2 + $0x10e]]  ;;  %v384_v22 = vsel %vm1055_vm6, %v382_v17, %v383_v13  ;;  %v393_v27 = vstv %s1066_s2  ;;  %v469_v29 = vsel %vm1081_vm9, %v382_v17, %v383_v13 }
  0x65   : > { %685 = vst [vmem:[%s911_s24 + $0x88] sm:$0xff] %v838_v56  ;;  %v427_v24 = vsel %vm1085_vm10, %v425_v21, %v426_v11  ;;  %s668_s18 = sld [smem:[#allocation2 + $0x10f]]  ;;  %v388_v25 = vsel %vm1072_vm8, %v384_v22, %v387_v15  ;;  %v392_v26 = vstv %s1069_s3  ;;  %v434_v31 = vmul.f32 %v424_v20, %v381_v16 }
  0x66   : > { %687 = vst [vmem:[%s911_s24 + $0x98] sm:$0xff] %v838_v56  ;;  %v400_v28 = vstv %s1079_s4  ;;  %v468_v33 = vsel %vm1106_vm11, %v466_v23, %v467_v19  ;;  %v437_v34 = vmul.f32 %v427_v24, %v381_v16  ;;  %v429_v36 = vsel %vm1061_vm7, %v392_v26, %v393_v27 }
  0x67   : > { %689 = vst [vmem:[%s911_s24 + $0xa8] sm:$0xff] %v838_v56  ;;  %v399_v32 = vstv %s660_s5  ;;  %v394_v37 = vsel %vm1055_vm6, %v392_v26, %v393_v27  ;;  %v473_v40 = vsel %vm1081_vm9, %v392_v26, %v393_v27  ;;  %v471_v41 = vsel %vm1106_vm11, %v469_v29, %v470_v30 }
  0x68   : > { %403 = vst [vmem:[%s911_s24] sm:$0xff] %v381_v16  ;;  %v390_v35 = vstv %s665_s11  ;;  %v432_v39 = vsel %vm1061_vm7, %v399_v32, %v400_v28  ;;  %v401_v45 = vsel %vm1055_vm6, %v399_v32, %v400_v28  ;;  %v476_v49 = vsel %vm1081_vm9, %v399_v32, %v400_v28 }
  0x69   : > { %691 = vst [vmem:[%s911_s24 + $0xb8] sm:$0xff] %v838_v56  ;;  %v389_v38 = vstv %s666_s13 }
  0x6a   : > { %670 = vst [vmem:[%s911_s24 + $0x10] sm:$0xff] %v388_v25  ;;  %v397_v42 = vstv %s667_s14  ;;  %v428_v43 = vsel %vm1061_vm7, %v389_v38, %v390_v35  ;;  %v391_v44 = vsel %vm1055_vm6, %v389_v38, %v390_v35  ;;  %v472_v53 = vsel %vm1081_vm9, %v389_v38, %v390_v35 }
  0x6b   : > { %v396_v46 = vstv %s668_s18  ;;  %v430_v47 = vsel %vm1085_vm10, %v428_v43, %v429_v36  ;;  %v395_v48 = vsel %vm1072_vm8, %v391_v44, %v394_v37  ;;  %v474_v0 = vsel %vm1106_vm11, %v472_v53, %v473_v40 }
  0x6c   : > { %v431_v50 = vsel %vm1061_vm7, %v396_v46, %v397_v42  ;;  %v435_v51 = vmul.f32 %v430_v47, %v388_v25  ;;  %672 = vst [vmem:[%s911_s24 + $0x20] sm:$0xff] %v395_v48  ;;  %v440_v52 = vmul.f32 %v424_v20, %v395_v48  ;;  %v443_v55 = vmul.f32 %v427_v24, %v395_v48 }
  0x6d   : > { %v433_v54 = vsel %vm1085_vm10, %v431_v50, %v432_v39  ;;  %v398_v56 = vsel %vm1055_vm6, %v396_v46, %v397_v42  ;;  %v475_v57 = vsel %vm1081_vm9, %v396_v46, %v397_v42 }
  0x6e   : > { %v438_v58 = vmul.f32 %v433_v54, %v388_v25  ;;  %v402_v59 = vsel %vm1072_vm8, %v398_v56, %v401_v45  ;;  %v436_v61 = vadd.f32 %v435_v51, %v434_v31  ;;  %v477_v60 = vsel %vm1106_vm11, %v475_v57, %v476_v49 }
  0x6f   : > { %674 = vst [vmem:[%s911_s24 + $0x30] sm:$0xff] %v402_v59  ;;  %v441_v62 = vmul.f32 %v430_v47, %v402_v59  ;;  %v444_v63 = vmul.f32 %v433_v54, %v402_v59 }
  0x70   : > { %676 = vst [vmem:[%s911_s24 + $0x40] sm:$0xff] %v436_v61  ;;  %v439_v3 = vadd.f32 %v438_v58, %v437_v34  ;;  %v478_v2 = vmul.f32 %v468_v33, %v436_v61  ;;  %v481_v4 = vmul.f32 %v471_v41, %v436_v61 }
  0x71   : > { %v442_v6 = vadd.f32 %v441_v62, %v440_v52  ;;  %v445_v5 = vadd.f32 %v444_v63, %v443_v55 }
  0x72   : > { %678 = vst [vmem:[%s911_s24 + $0x50] sm:$0xff] %v439_v3  ;;  %v479_v7 = vmul.f32 %v474_v0, %v439_v3  ;;  %v482_v8 = vmul.f32 %v477_v60, %v439_v3 }
  0x73   : > { %680 = vst [vmem:[%s911_s24 + $0x60] sm:$0xff] %v442_v6  ;;  %v484_v9 = vmul.f32 %v468_v33, %v442_v6  ;;  %v485_v1 = vmul.f32 %v474_v0, %v445_v5  ;;  %v487_v10 = vmul.f32 %v471_v41, %v442_v6  ;;  %v488_v11 = vmul.f32 %v477_v60, %v445_v5 }
  0x74   : > { %682 = vst [vmem:[%s911_s24 + $0x70] sm:$0xff] %v445_v5  ;;  %v480_v12 = vadd.f32 %v479_v7, %v478_v2  ;;  %v483_v13 = vadd.f32 %v482_v8, %v481_v4 }
  0x75   : > { %v486_v14 = vadd.f32 %v485_v1, %v484_v9  ;;  %v489_v15 = vadd.f32 %v488_v11, %v487_v10 }
  0x76   : > { %684 = vst [vmem:[%s911_s24 + $0x80] sm:$0xff] %v480_v12 }
  0x77   : > { %686 = vst [vmem:[%s911_s24 + $0x90] sm:$0xff] %v483_v13 }
  0x78   : > { %688 = vst [vmem:[%s911_s24 + $0xa0] sm:$0xff] %v486_v14 }
  0x79   : > { %690 = vst [vmem:[%s911_s24 + $0xb0] sm:$0xff] %v489_v15 }
  0x7a PF: > { %s696_s19 = smul.u32 192, %s872_s10  ;;  %s519_s20 = sshll.u32 %s911_s24, 4  ;;  %s520_s20 = int_to_ptr.vmem [resolvable:$true] %s519_s20 }
  0x7b   : > { %s507_s27 = scalar_lea.sflag [#allocation3], %s106_s22  ;;  %s787_s10 = scalar_lea.hbm %s1219_s1, 576 }
  0x7c   : > { %s518_s25 = scalar_lea.hbm %s1219_s1, %s696_s19 }
  0x7d   : > { %s521_s26 = sshll.u32 %s518_s25, 4  ;;  %s522_s26 = int_to_ptr.hbm [resolvable:$true] %s521_s26 }
  0x7e   : > { %s781_s28 = sshra.s32 %s522_s26, 4  ;;  %s782_s28 = int_to_ptr.hbm [resolvable:$true] %s781_s28 }
  0x7f   : > { %s783_s29 = scalar_lea.hbm %s782_s28, 192  ;;  %p788_p7 = scmp.lt.s32.totalorder %s782_s28, %s1219_s1 }
  0x80   : > { %p784_p2 = scmp.ne.s32.totalorder %s782_s28, %s783_s29  ;;  %p789_p8 = scmp.lt.s32.totalorder %s787_s10, %s783_s29 }
  0x82   : > { %p785_p3 = pnand %p784_p2, %p889_p5  ;;  %p790_p9 = por %p789_p8, %p788_p7 }
  0x84   : > { %p786_p4 = pneg %p785_p3 }
  0x86   : > { %p791_p10 = pnand %p790_p9, %p786_p4 }
  0x88   : > { %794 = shalt.err (!%p791_p10)
}
  0x89   : > { %s839_s22 = smov 128   ;;  %s840_s4 = smov 8  }
  0x8a   : > { %701 = dma.vmem_to_hbm [thread:$0]  (%p889_p5), %s520_s20, 3072, %s522_s26, %s507_s27, %s839_s22, %s839_s22, %s840_s4  }
  0x8b PF: > { %p713_p11 = scmp.ge.s32.totalorder %s833_s9, 2  ;;  %s536_s5 = sand.u32 1, %s821_s6  }
  0x8c   : > { %s537_s11 = scalar_lea.sflag [#allocation3], %s536_s5 }
  0x8d   : > { %p708_p12 = pnand %p713_p11, %p893_p6 }
  0x8f   : > { %p709_p13 = pneg %p708_p12 }
  0x91   : > { %816 = dma.done.wait (%p709_p13), %s537_s11, 3072  }
  0x92   : > { %818 = vsyncadd (%p709_p13), %s537_s11, 4294964224  ;;  %p12_p0 = scmp.ge.s32.totalorder %s876_s12, 5   ;;  %s1246_s6 = smov %s825_s7 }
  0x93   : > { %s1247_s7 = smov %s829_s8  ;;  %s1248_s8 = smov %s887_s15 }
  0x94   : > { %s1249_s9 = smov %s876_s12  ;;  %14 = sbr.rel (!%p12_p0) target bundleno = 4 (0x4), region = 142 }
  0x99   :  { %543 = vsyncpa [#allocation3], 1 }
  0x9a   :  { %545 = vsyncpa [#allocation3 + $0x1], 1 }
  0x9b   :  { %546 = vsyncpa [#allocation4], 1 }
  0x9c   :  { %548 = vsyncpa [#allocation4 + $0x1], 1 }

</bundles_post_ra>
